<compile_context>
chip_gen: v7x
topology: tpu7x:2x2x1
jax: 0.10.0
libtpu: 0.0.40
codegen_flags: <defaults>
</compile_context>

<pallas_src>
import functools
import math

import jax
import jax.numpy as jnp
import numpy as np
from jax import lax
from jax.experimental import pallas as pl
from jax.experimental.pallas import tpu as pltpu

COMPUTE_DTYPE = jnp.bfloat16  # MXU-native; jnp.float32 gives closer parity w/ PyTorch


def _conv_out(size, k, s):
    return (size - k) // s + 1


# ----------------------------------------------------------------------------
# Static per-layer configuration (fc1/fc2 are treated as (ch,cw)/(1,1) convs)
# ----------------------------------------------------------------------------
def _layer_cfgs(input_shape, n_actions):
    c, h, w = input_shape
    cfgs = []
    oh, ow = _conv_out(h, 8, 4), _conv_out(w, 8, 4)
    cfgs.append(dict(C=c, H=h, W=w, kh=8, kw=8, s=4, OC=16, oh=oh, ow=ow, relu=True))
    h, w, c = oh, ow, 16
    oh, ow = _conv_out(h, 4, 2), _conv_out(w, 4, 2)
    cfgs.append(dict(C=c, H=h, W=w, kh=4, kw=4, s=2, OC=32, oh=oh, ow=ow, relu=True))
    h, w, c = oh, ow, 32
    oh, ow = _conv_out(h, 3, 1), _conv_out(w, 3, 1)
    cfgs.append(dict(C=c, H=h, W=w, kh=3, kw=3, s=1, OC=32, oh=oh, ow=ow, relu=True))
    h, w, c = oh, ow, 32
    # fc1 == valid conv with kernel (h, w) producing 1x1 spatial, 256 channels
    cfgs.append(dict(C=c, H=h, W=w, kh=h, kw=w, s=1, OC=256, oh=1, ow=1, relu=True))
    # fc2 == 1x1 conv
    cfgs.append(dict(C=256, H=1, W=1, kh=1, kw=1, s=1, OC=n_actions, oh=1, ow=1,
                     relu=False))
    for cfg in cfgs:
        # width-selection matrix needed unless it would be the identity
        cfg["has_t"] = not (cfg["kw"] == 1 and cfg["s"] == 1 and cfg["ow"] == cfg["W"])
    return cfgs


def _select_matrix(w_in, kw, stride, ow, nb, dtype):
    """0/1 matrix T with T[n*w_in + stride*x + j, (j*nb + n)*ow + x] = 1.

    Right-multiplying the (H*C, nb*w_in) activation slab by T performs the
    strided width part of im2col for all kernel offsets j at once.
    Built on the host at trace time -> a compile-time constant.
    """
    t = np.zeros((nb * w_in, kw * nb * ow), dtype=np.float32)
    for n in range(nb):
        for j in range(kw):
            for x in range(ow):
                t[n * w_in + stride * x + j, (j * nb + n) * ow + x] = 1.0
    return jnp.asarray(t, dtype=dtype)


# ----------------------------------------------------------------------------
# The fused kernel: whole network, one invocation per batch block.
# Activation format inside the kernel: 2D (H*C, nb*W), row = h*C + c,
# column = n*W + w.  Each layer keeps this format, so layers chain with no
# reshapes/transposes (only matmuls, static slices, concatenations).
# ----------------------------------------------------------------------------
def _dqn_kernel(*refs, cfgs, nb):
    x_ref = refs[0]
    o_ref = refs[-1]
    lrefs = refs[1:-1]

    a = x_ref[...]                       # (H*C, nb*W), COMPUTE_DTYPE
    ri = 0
    n_layers = len(cfgs)
    for li, cfg in enumerate(cfgs):
        C, kh, kw, s = cfg["C"], cfg["kh"], cfg["kw"], cfg["s"]
        oh, ow = cfg["oh"], cfg["ow"]
        last = li == n_layers - 1

        if cfg["has_t"]:
            t = lrefs[ri][...]; ri += 1
        w = lrefs[ri][...]; ri += 1      # (OC, kw*kh*C), COMPUTE_DTYPE
        b = lrefs[ri][...]; ri += 1      # (OC, 1), float32

        if cfg["has_t"]:
            # width part of im2col: columns become (j, n, x).  Exact copy of
            # activation values (0/1 matrix, f32 accumulation).
            a = jnp.dot(a, t, preferred_element_type=jnp.float32).astype(w.dtype)

        ncol = nb * ow
        rows = []
        for y in range(oh):              # static loops, fully unrolled
            r0 = s * y * C               # rows for input heights s*y .. s*y+kh-1
            if kw > 1:
                p = jnp.concatenate(
                    [a[r0:r0 + kh * C, j * ncol:(j + 1) * ncol] for j in range(kw)],
                    axis=0)              # (kw*kh*C, nb*ow), rows ordered (j, i, c)
            else:
                p = a[r0:r0 + kh * C, :]
            acc = jnp.dot(w, p, preferred_element_type=jnp.float32) + b
            if cfg["relu"]:
                acc = jnp.maximum(acc, 0.0)
            rows.append(acc if last else acc.astype(w.dtype))
        a = rows[0] if oh == 1 else jnp.concatenate(rows, axis=0)
        # a is now the next layer's (oh*OC, nb*ow) activation slab

    # a: (n_actions, nb) float32 -> store as (nb, n_actions)
    o_ref[...] = a.T.astype(o_ref.dtype)


# ----------------------------------------------------------------------------
# Parameters: raw (PyTorch-layout, f32) init + one-time kernel-ready packing
# ----------------------------------------------------------------------------
def init_dqn_params(key, input_shape, n_actions):
    c, h, w = input_shape
    ch = _conv_out(_conv_out(_conv_out(h, 8, 4), 4, 2), 3, 1)
    cw = _conv_out(_conv_out(_conv_out(w, 8, 4), 4, 2), 3, 1)
    lin_in = ch * cw * 32
    ks = jax.random.split(key, 5)

    def he(k, shape, fan_out):  # kaiming_normal_, mode='fan_out', relu gain
        return ((2.0 / fan_out) ** 0.5) * jax.random.normal(k, shape, jnp.float32)

    return {
        "conv1_w": he(ks[0], (16, c, 8, 8), 16 * 8 * 8),
        "conv1_b": jnp.zeros((16,), jnp.float32),
        "conv2_w": he(ks[1], (32, 16, 4, 4), 32 * 4 * 4),
        "conv2_b": jnp.zeros((32,), jnp.float32),
        "conv3_w": he(ks[2], (32, 32, 3, 3), 32 * 3 * 3),
        "conv3_b": jnp.zeros((32,), jnp.float32),
        "fc1_w": he(ks[3], (256, lin_in), 256),
        "fc1_b": jnp.zeros((256,), jnp.float32),
        "fc2_w": he(ks[4], (n_actions, 256), n_actions),
        "fc2_b": jnp.zeros((n_actions,), jnp.float32),
    }


def prepare_params(raw, input_shape, n_actions):
    """One-time repack: (OC,C,kh,kw) -> (OC, kw*kh*C) bf16, biases -> (OC,1) f32."""
    cfgs = _layer_cfgs(input_shape, n_actions)
    ch, cw = cfgs[3]["H"], cfgs[3]["W"]

    def conv_pack(wt):
        oc = wt.shape[0]
        return wt.transpose(0, 3, 2, 1).reshape(oc, -1).astype(COMPUTE_DTYPE)

    p = {}
    p["w0"], p["b0"] = conv_pack(raw["conv1_w"]), raw["conv1_b"].reshape(-1, 1)
    p["w1"], p["b1"] = conv_pack(raw["conv2_w"]), raw["conv2_b"].reshape(-1, 1)
    p["w2"], p["b2"] = conv_pack(raw["conv3_w"]), raw["conv3_b"].reshape(-1, 1)
    p["w3"] = conv_pack(raw["fc1_w"].reshape(256, 32, ch, cw))
    p["b3"] = raw["fc1_b"].reshape(-1, 1)
    p["w4"] = conv_pack(raw["fc2_w"].reshape(raw["fc2_w"].shape[0], 256, 1, 1))
    p["b4"] = raw["fc2_b"].reshape(-1, 1)
    return p


# ----------------------------------------------------------------------------
# Forward wrapper: single fused pallas_call, batch-blocked grid.
# ----------------------------------------------------------------------------
def dqn_forward(params, x, *, input_shape, n_actions):
    n = x.shape[0]
    c0, h0, w0 = input_shape
    cfgs = _layer_cfgs(input_shape, n_actions)

    # Batch blocking: single block for small batches; for large batches pick a
    # block that keeps (8,128) tiling constraints and per-block VMEM modest.
    if n <= 8:
        nb = n
    else:
        nb = max(8, 128 // math.gcd(w0, 128))
    npad = -(-n // nb) * nb
    if npad != n:
        x = jnp.concatenate(
            [x, jnp.zeros((npad - n,) + x.shape[1:], x.dtype)], axis=0)
    grid = (npad // nb,)

    # (N, C, H, W) -> (H*C, N*W) slab (the only wrapper-side data movement).
    x2d = x.transpose(2, 1, 0, 3).reshape(h0 * c0, npad * w0).astype(COMPUTE_DTYPE)

    inputs = [x2d]
    in_specs = [pl.BlockSpec((h0 * c0, nb * w0), lambda i: (0, i))]
    for li, cfg in enumerate(cfgs):
        if cfg["has_t"]:
            t = _select_matrix(cfg["W"], cfg["kw"], cfg["s"], cfg["ow"], nb,
                               COMPUTE_DTYPE)
            inputs.append(t)
            in_specs.append(pl.BlockSpec(t.shape, lambda i: (0, 0)))
        wv, bv = params[f"w{li}"], params[f"b{li}"]
        inputs.append(wv)
        in_specs.append(pl.BlockSpec(wv.shape, lambda i: (0, 0)))
        inputs.append(bv)
        in_specs.append(pl.BlockSpec(bv.shape, lambda i: (0, 0)))

    out = pl.pallas_call(
        functools.partial(_dqn_kernel, cfgs=cfgs, nb=nb),
        out_shape=jax.ShapeDtypeStruct((npad, n_actions), jnp.float32),
        grid=grid,
        in_specs=in_specs,
        out_specs=pl.BlockSpec((nb, n_actions), lambda i: (i, 0)),
        compiler_params=pltpu.CompilerParams(
            dimension_semantics=("parallel",)),  # v7x: shard batch blocks across TCs
    )(*inputs)
    return out[:n]


# ----------------------------------------------------------------------------
# Pure-JAX f32 reference (for a loose numerical sanity check only)
# ----------------------------------------------------------------------------
def dqn_reference(raw, x):
    def conv(y, w, b, s):
        y = lax.conv_general_dilated(
            y, w, (s, s), "VALID", dimension_numbers=("NCHW", "OIHW", "NCHW"))
        return jax.nn.relu(y + b[None, :, None, None])

    y = conv(x, raw["conv1_w"], raw["conv1_b"], 4)
    y = conv(y, raw["conv2_w"], raw["conv2_b"], 2)
    y = conv(y, raw["conv3_w"], raw["conv3_b"], 1)
    y = y.reshape(y.shape[0], -1)
    y = jax.nn.relu(y @ raw["fc1_w"].T + raw["fc1_b"])
    return y @ raw["fc2_w"].T + raw["fc2_b"]


if __name__ == "__main__":
    # Small but conv-stack-valid shapes: 36x36 -> 8x8 -> 3x3 -> 1x1 spatial.
    batch = 2
    input_shape = (4, 36, 36)  # (frames, height, width)
    n_actions = 6

    key = jax.random.PRNGKey(0)
    pkey, xkey = jax.random.split(key)
    raw = init_dqn_params(pkey, input_shape, n_actions)
    params = prepare_params(raw, input_shape, n_actions)
    x = jax.random.normal(xkey, (batch,) + input_shape, dtype=jnp.float32)

    fwd = jax.jit(functools.partial(
        dqn_forward, input_shape=input_shape, n_actions=n_actions))
    q_values = jax.block_until_ready(fwd(params, x))
    assert q_values.shape == (batch, n_actions)
    assert q_values.dtype == jnp.float32

    # Loose check vs f32 reference (bf16 MXU dots -> expect ~1e-2 abs diff).
    ref = jax.block_until_ready(jax.jit(dqn_reference)(raw, x))
    max_err = float(jnp.max(jnp.abs(q_values - ref)))
    assert max_err < 0.2, f"mismatch vs reference: max abs err {max_err}"

    print("KERNEL_OK")
</pallas_src>

<mosaic_0001>
module attributes {stable_mosaic.version = 11 : i64} {
  func.func @_dqn_kernel(%arg0: i32, %arg1: memref<144x72xbf16, #tpu.memory_space<vmem>>, %arg2: memref<72x128xbf16, #tpu.memory_space<vmem>>, %arg3: memref<16x256xbf16, #tpu.memory_space<vmem>>, %arg4: memref<16x1xf32, #tpu.memory_space<vmem>>, %arg5: memref<16x24xbf16, #tpu.memory_space<vmem>>, %arg6: memref<32x256xbf16, #tpu.memory_space<vmem>>, %arg7: memref<32x1xf32, #tpu.memory_space<vmem>>, %arg8: memref<6x6xbf16, #tpu.memory_space<vmem>>, %arg9: memref<32x288xbf16, #tpu.memory_space<vmem>>, %arg10: memref<32x1xf32, #tpu.memory_space<vmem>>, %arg11: memref<256x32xbf16, #tpu.memory_space<vmem>>, %arg12: memref<256x1xf32, #tpu.memory_space<vmem>>, %arg13: memref<6x256xbf16, #tpu.memory_space<vmem>>, %arg14: memref<6x1xf32, #tpu.memory_space<vmem>>, %arg15: memref<2x6xf32, #tpu.memory_space<vmem>>) attributes {dimension_semantics = [#tpu.dimension_semantics<parallel>], iteration_bounds = array<i64: 1>, scalar_prefetch = 0 : i64, scratch_operands = 0 : i64, tpu.core_type = #tpu.core_type<tc>, window_params = [{transform_indices = @transform_0, window_bounds = array<i64: 144, 72>}, {pipeline_mode = #tpu.pipeline_mode<synchronous>, transform_indices = @transform_1, window_bounds = array<i64: 72, 128>}, {pipeline_mode = #tpu.pipeline_mode<synchronous>, transform_indices = @transform_2, window_bounds = array<i64: 16, 256>}, {pipeline_mode = #tpu.pipeline_mode<synchronous>, transform_indices = @transform_3, window_bounds = array<i64: 16, 1>}, {pipeline_mode = #tpu.pipeline_mode<synchronous>, transform_indices = @transform_4, window_bounds = array<i64: 16, 24>}, {pipeline_mode = #tpu.pipeline_mode<synchronous>, transform_indices = @transform_5, window_bounds = array<i64: 32, 256>}, {pipeline_mode = #tpu.pipeline_mode<synchronous>, transform_indices = @transform_6, window_bounds = array<i64: 32, 1>}, {pipeline_mode = #tpu.pipeline_mode<synchronous>, transform_indices = @transform_7, window_bounds = array<i64: 6, 6>}, {pipeline_mode = #tpu.pipeline_mode<synchronous>, transform_indices = @transform_8, window_bounds = array<i64: 32, 288>}, {pipeline_mode = #tpu.pipeline_mode<synchronous>, transform_indices = @transform_9, window_bounds = array<i64: 32, 1>}, {pipeline_mode = #tpu.pipeline_mode<synchronous>, transform_indices = @transform_10, window_bounds = array<i64: 256, 32>}, {pipeline_mode = #tpu.pipeline_mode<synchronous>, transform_indices = @transform_11, window_bounds = array<i64: 256, 1>}, {pipeline_mode = #tpu.pipeline_mode<synchronous>, transform_indices = @transform_12, window_bounds = array<i64: 6, 256>}, {pipeline_mode = #tpu.pipeline_mode<synchronous>, transform_indices = @transform_13, window_bounds = array<i64: 6, 1>}, {transform_indices = @transform_14, window_bounds = array<i64: 2, 6>}]} {
    %c0 = arith.constant 0 : index
    %c0_0 = arith.constant 0 : index
    %0 = vector.load %arg1[%c0, %c0_0] : memref<144x72xbf16, #tpu.memory_space<vmem>>, vector<144x72xbf16>
    %c0_1 = arith.constant 0 : index
    %c0_2 = arith.constant 0 : index
    %1 = vector.load %arg2[%c0_1, %c0_2] : memref<72x128xbf16, #tpu.memory_space<vmem>>, vector<72x128xbf16>
    %c0_3 = arith.constant 0 : index
    %c0_4 = arith.constant 0 : index
    %2 = vector.load %arg3[%c0_3, %c0_4] : memref<16x256xbf16, #tpu.memory_space<vmem>>, vector<16x256xbf16>
    %c0_5 = arith.constant 0 : index
    %c0_6 = arith.constant 0 : index
    %3 = vector.load %arg4[%c0_5, %c0_6] : memref<16x1xf32, #tpu.memory_space<vmem>>, vector<16x1xf32>
    %cst = arith.constant dense<0.000000e+00> : vector<144x128xf32>
    %4 = tpu.matmul %0, %1, %cst {dimension_numbers = #tpu.dot_dimension_numbers<[1], [0], [0], [1], [0, 0, 1, 1], [], []>} : vector<144x72xbf16>, vector<72x128xbf16>, vector<144x128xf32> -> vector<144x128xf32>
    %5 = arith.truncf %4 : vector<144x128xf32> to vector<144x128xbf16>
    %6 = vector.extract_strided_slice %5 {offsets = [0, 0], sizes = [32, 16], strides = [1, 1]} : vector<144x128xbf16> to vector<32x16xbf16>
    %7 = vector.extract_strided_slice %5 {offsets = [0, 16], sizes = [32, 16], strides = [1, 1]} : vector<144x128xbf16> to vector<32x16xbf16>
    %8 = vector.extract_strided_slice %5 {offsets = [0, 32], sizes = [32, 16], strides = [1, 1]} : vector<144x128xbf16> to vector<32x16xbf16>
    %9 = vector.extract_strided_slice %5 {offsets = [0, 48], sizes = [32, 16], strides = [1, 1]} : vector<144x128xbf16> to vector<32x16xbf16>
    %10 = vector.extract_strided_slice %5 {offsets = [0, 64], sizes = [32, 16], strides = [1, 1]} : vector<144x128xbf16> to vector<32x16xbf16>
    %11 = vector.extract_strided_slice %5 {offsets = [0, 80], sizes = [32, 16], strides = [1, 1]} : vector<144x128xbf16> to vector<32x16xbf16>
    %12 = vector.extract_strided_slice %5 {offsets = [0, 96], sizes = [32, 16], strides = [1, 1]} : vector<144x128xbf16> to vector<32x16xbf16>
    %13 = vector.extract_strided_slice %5 {offsets = [0, 112], sizes = [32, 16], strides = [1, 1]} : vector<144x128xbf16> to vector<32x16xbf16>
    %14 = tpu.concatenate %6, %7, %8, %9, %10, %11, %12, %13 in 0 : vector<32x16xbf16>, vector<32x16xbf16>, vector<32x16xbf16>, vector<32x16xbf16>, vector<32x16xbf16>, vector<32x16xbf16>, vector<32x16xbf16>, vector<32x16xbf16> -> vector<256x16xbf16>
    %cst_7 = arith.constant dense<0.000000e+00> : vector<16x16xf32>
    %15 = tpu.matmul %2, %14, %cst_7 {dimension_numbers = #tpu.dot_dimension_numbers<[1], [0], [0], [1], [0, 0, 1, 1], [], []>} : vector<16x256xbf16>, vector<256x16xbf16>, vector<16x16xf32> -> vector<16x16xf32>
    %16 = vector.broadcast %3 : vector<16x1xf32> to vector<16x16xf32>
    %17 = arith.addf %15, %16 : vector<16x16xf32>
    %cst_8 = arith.constant 0.000000e+00 : f32
    %18 = vector.broadcast %cst_8 : f32 to vector<16x16xf32>
    %19 = arith.maximumf %17, %18 : vector<16x16xf32>
    %20 = arith.truncf %19 : vector<16x16xf32> to vector<16x16xbf16>
    %21 = vector.extract_strided_slice %5 {offsets = [16, 0], sizes = [32, 16], strides = [1, 1]} : vector<144x128xbf16> to vector<32x16xbf16>
    %22 = vector.extract_strided_slice %5 {offsets = [16, 16], sizes = [32, 16], strides = [1, 1]} : vector<144x128xbf16> to vector<32x16xbf16>
    %23 = vector.extract_strided_slice %5 {offsets = [16, 32], sizes = [32, 16], strides = [1, 1]} : vector<144x128xbf16> to vector<32x16xbf16>
    %24 = vector.extract_strided_slice %5 {offsets = [16, 48], sizes = [32, 16], strides = [1, 1]} : vector<144x128xbf16> to vector<32x16xbf16>
    %25 = vector.extract_strided_slice %5 {offsets = [16, 64], sizes = [32, 16], strides = [1, 1]} : vector<144x128xbf16> to vector<32x16xbf16>
    %26 = vector.extract_strided_slice %5 {offsets = [16, 80], sizes = [32, 16], strides = [1, 1]} : vector<144x128xbf16> to vector<32x16xbf16>
    %27 = vector.extract_strided_slice %5 {offsets = [16, 96], sizes = [32, 16], strides = [1, 1]} : vector<144x128xbf16> to vector<32x16xbf16>
    %28 = vector.extract_strided_slice %5 {offsets = [16, 112], sizes = [32, 16], strides = [1, 1]} : vector<144x128xbf16> to vector<32x16xbf16>
    %29 = tpu.concatenate %21, %22, %23, %24, %25, %26, %27, %28 in 0 : vector<32x16xbf16>, vector<32x16xbf16>, vector<32x16xbf16>, vector<32x16xbf16>, vector<32x16xbf16>, vector<32x16xbf16>, vector<32x16xbf16>, vector<32x16xbf16> -> vector<256x16xbf16>
    %cst_9 = arith.constant dense<0.000000e+00> : vector<16x16xf32>
    %30 = tpu.matmul %2, %29, %cst_9 {dimension_numbers = #tpu.dot_dimension_numbers<[1], [0], [0], [1], [0, 0, 1, 1], [], []>} : vector<16x256xbf16>, vector<256x16xbf16>, vector<16x16xf32> -> vector<16x16xf32>
    %31 = vector.broadcast %3 : vector<16x1xf32> to vector<16x16xf32>
    %32 = arith.addf %30, %31 : vector<16x16xf32>
    %cst_10 = arith.constant 0.000000e+00 : f32
    %33 = vector.broadcast %cst_10 : f32 to vector<16x16xf32>
    %34 = arith.maximumf %32, %33 : vector<16x16xf32>
    %35 = arith.truncf %34 : vector<16x16xf32> to vector<16x16xbf16>
    %36 = vector.extract_strided_slice %5 {offsets = [32, 0], sizes = [32, 16], strides = [1, 1]} : vector<144x128xbf16> to vector<32x16xbf16>
    %37 = vector.extract_strided_slice %5 {offsets = [32, 16], sizes = [32, 16], strides = [1, 1]} : vector<144x128xbf16> to vector<32x16xbf16>
    %38 = vector.extract_strided_slice %5 {offsets = [32, 32], sizes = [32, 16], strides = [1, 1]} : vector<144x128xbf16> to vector<32x16xbf16>
    %39 = vector.extract_strided_slice %5 {offsets = [32, 48], sizes = [32, 16], strides = [1, 1]} : vector<144x128xbf16> to vector<32x16xbf16>
    %40 = vector.extract_strided_slice %5 {offsets = [32, 64], sizes = [32, 16], strides = [1, 1]} : vector<144x128xbf16> to vector<32x16xbf16>
    %41 = vector.extract_strided_slice %5 {offsets = [32, 80], sizes = [32, 16], strides = [1, 1]} : vector<144x128xbf16> to vector<32x16xbf16>
    %42 = vector.extract_strided_slice %5 {offsets = [32, 96], sizes = [32, 16], strides = [1, 1]} : vector<144x128xbf16> to vector<32x16xbf16>
    %43 = vector.extract_strided_slice %5 {offsets = [32, 112], sizes = [32, 16], strides = [1, 1]} : vector<144x128xbf16> to vector<32x16xbf16>
    %44 = tpu.concatenate %36, %37, %38, %39, %40, %41, %42, %43 in 0 : vector<32x16xbf16>, vector<32x16xbf16>, vector<32x16xbf16>, vector<32x16xbf16>, vector<32x16xbf16>, vector<32x16xbf16>, vector<32x16xbf16>, vector<32x16xbf16> -> vector<256x16xbf16>
    %cst_11 = arith.constant dense<0.000000e+00> : vector<16x16xf32>
    %45 = tpu.matmul %2, %44, %cst_11 {dimension_numbers = #tpu.dot_dimension_numbers<[1], [0], [0], [1], [0, 0, 1, 1], [], []>} : vector<16x256xbf16>, vector<256x16xbf16>, vector<16x16xf32> -> vector<16x16xf32>
    %46 = vector.broadcast %3 : vector<16x1xf32> to vector<16x16xf32>
    %47 = arith.addf %45, %46 : vector<16x16xf32>
    %cst_12 = arith.constant 0.000000e+00 : f32
    %48 = vector.broadcast %cst_12 : f32 to vector<16x16xf32>
    %49 = arith.maximumf %47, %48 : vector<16x16xf32>
    %50 = arith.truncf %49 : vector<16x16xf32> to vector<16x16xbf16>
    %51 = vector.extract_strided_slice %5 {offsets = [48, 0], sizes = [32, 16], strides = [1, 1]} : vector<144x128xbf16> to vector<32x16xbf16>
    %52 = vector.extract_strided_slice %5 {offsets = [48, 16], sizes = [32, 16], strides = [1, 1]} : vector<144x128xbf16> to vector<32x16xbf16>
    %53 = vector.extract_strided_slice %5 {offsets = [48, 32], sizes = [32, 16], strides = [1, 1]} : vector<144x128xbf16> to vector<32x16xbf16>
    %54 = vector.extract_strided_slice %5 {offsets = [48, 48], sizes = [32, 16], strides = [1, 1]} : vector<144x128xbf16> to vector<32x16xbf16>
    %55 = vector.extract_strided_slice %5 {offsets = [48, 64], sizes = [32, 16], strides = [1, 1]} : vector<144x128xbf16> to vector<32x16xbf16>
    %56 = vector.extract_strided_slice %5 {offsets = [48, 80], sizes = [32, 16], strides = [1, 1]} : vector<144x128xbf16> to vector<32x16xbf16>
    %57 = vector.extract_strided_slice %5 {offsets = [48, 96], sizes = [32, 16], strides = [1, 1]} : vector<144x128xbf16> to vector<32x16xbf16>
    %58 = vector.extract_strided_slice %5 {offsets = [48, 112], sizes = [32, 16], strides = [1, 1]} : vector<144x128xbf16> to vector<32x16xbf16>
    %59 = tpu.concatenate %51, %52, %53, %54, %55, %56, %57, %58 in 0 : vector<32x16xbf16>, vector<32x16xbf16>, vector<32x16xbf16>, vector<32x16xbf16>, vector<32x16xbf16>, vector<32x16xbf16>, vector<32x16xbf16>, vector<32x16xbf16> -> vector<256x16xbf16>
    %cst_13 = arith.constant dense<0.000000e+00> : vector<16x16xf32>
    %60 = tpu.matmul %2, %59, %cst_13 {dimension_numbers = #tpu.dot_dimension_numbers<[1], [0], [0], [1], [0, 0, 1, 1], [], []>} : vector<16x256xbf16>, vector<256x16xbf16>, vector<16x16xf32> -> vector<16x16xf32>
    %61 = vector.broadcast %3 : vector<16x1xf32> to vector<16x16xf32>
    %62 = arith.addf %60, %61 : vector<16x16xf32>
    %cst_14 = arith.constant 0.000000e+00 : f32
    %63 = vector.broadcast %cst_14 : f32 to vector<16x16xf32>
    %64 = arith.maximumf %62, %63 : vector<16x16xf32>
    %65 = arith.truncf %64 : vector<16x16xf32> to vector<16x16xbf16>
    %66 = vector.extract_strided_slice %5 {offsets = [64, 0], sizes = [32, 16], strides = [1, 1]} : vector<144x128xbf16> to vector<32x16xbf16>
    %67 = vector.extract_strided_slice %5 {offsets = [64, 16], sizes = [32, 16], strides = [1, 1]} : vector<144x128xbf16> to vector<32x16xbf16>
    %68 = vector.extract_strided_slice %5 {offsets = [64, 32], sizes = [32, 16], strides = [1, 1]} : vector<144x128xbf16> to vector<32x16xbf16>
    %69 = vector.extract_strided_slice %5 {offsets = [64, 48], sizes = [32, 16], strides = [1, 1]} : vector<144x128xbf16> to vector<32x16xbf16>
    %70 = vector.extract_strided_slice %5 {offsets = [64, 64], sizes = [32, 16], strides = [1, 1]} : vector<144x128xbf16> to vector<32x16xbf16>
    %71 = vector.extract_strided_slice %5 {offsets = [64, 80], sizes = [32, 16], strides = [1, 1]} : vector<144x128xbf16> to vector<32x16xbf16>
    %72 = vector.extract_strided_slice %5 {offsets = [64, 96], sizes = [32, 16], strides = [1, 1]} : vector<144x128xbf16> to vector<32x16xbf16>
    %73 = vector.extract_strided_slice %5 {offsets = [64, 112], sizes = [32, 16], strides = [1, 1]} : vector<144x128xbf16> to vector<32x16xbf16>
    %74 = tpu.concatenate %66, %67, %68, %69, %70, %71, %72, %73 in 0 : vector<32x16xbf16>, vector<32x16xbf16>, vector<32x16xbf16>, vector<32x16xbf16>, vector<32x16xbf16>, vector<32x16xbf16>, vector<32x16xbf16>, vector<32x16xbf16> -> vector<256x16xbf16>
    %cst_15 = arith.constant dense<0.000000e+00> : vector<16x16xf32>
    %75 = tpu.matmul %2, %74, %cst_15 {dimension_numbers = #tpu.dot_dimension_numbers<[1], [0], [0], [1], [0, 0, 1, 1], [], []>} : vector<16x256xbf16>, vector<256x16xbf16>, vector<16x16xf32> -> vector<16x16xf32>
    %76 = vector.broadcast %3 : vector<16x1xf32> to vector<16x16xf32>
    %77 = arith.addf %75, %76 : vector<16x16xf32>
    %cst_16 = arith.constant 0.000000e+00 : f32
    %78 = vector.broadcast %cst_16 : f32 to vector<16x16xf32>
    %79 = arith.maximumf %77, %78 : vector<16x16xf32>
    %80 = arith.truncf %79 : vector<16x16xf32> to vector<16x16xbf16>
    %81 = vector.extract_strided_slice %5 {offsets = [80, 0], sizes = [32, 16], strides = [1, 1]} : vector<144x128xbf16> to vector<32x16xbf16>
    %82 = vector.extract_strided_slice %5 {offsets = [80, 16], sizes = [32, 16], strides = [1, 1]} : vector<144x128xbf16> to vector<32x16xbf16>
    %83 = vector.extract_strided_slice %5 {offsets = [80, 32], sizes = [32, 16], strides = [1, 1]} : vector<144x128xbf16> to vector<32x16xbf16>
    %84 = vector.extract_strided_slice %5 {offsets = [80, 48], sizes = [32, 16], strides = [1, 1]} : vector<144x128xbf16> to vector<32x16xbf16>
    %85 = vector.extract_strided_slice %5 {offsets = [80, 64], sizes = [32, 16], strides = [1, 1]} : vector<144x128xbf16> to vector<32x16xbf16>
    %86 = vector.extract_strided_slice %5 {offsets = [80, 80], sizes = [32, 16], strides = [1, 1]} : vector<144x128xbf16> to vector<32x16xbf16>
    %87 = vector.extract_strided_slice %5 {offsets = [80, 96], sizes = [32, 16], strides = [1, 1]} : vector<144x128xbf16> to vector<32x16xbf16>
    %88 = vector.extract_strided_slice %5 {offsets = [80, 112], sizes = [32, 16], strides = [1, 1]} : vector<144x128xbf16> to vector<32x16xbf16>
    %89 = tpu.concatenate %81, %82, %83, %84, %85, %86, %87, %88 in 0 : vector<32x16xbf16>, vector<32x16xbf16>, vector<32x16xbf16>, vector<32x16xbf16>, vector<32x16xbf16>, vector<32x16xbf16>, vector<32x16xbf16>, vector<32x16xbf16> -> vector<256x16xbf16>
    %cst_17 = arith.constant dense<0.000000e+00> : vector<16x16xf32>
    %90 = tpu.matmul %2, %89, %cst_17 {dimension_numbers = #tpu.dot_dimension_numbers<[1], [0], [0], [1], [0, 0, 1, 1], [], []>} : vector<16x256xbf16>, vector<256x16xbf16>, vector<16x16xf32> -> vector<16x16xf32>
    %91 = vector.broadcast %3 : vector<16x1xf32> to vector<16x16xf32>
    %92 = arith.addf %90, %91 : vector<16x16xf32>
    %cst_18 = arith.constant 0.000000e+00 : f32
    %93 = vector.broadcast %cst_18 : f32 to vector<16x16xf32>
    %94 = arith.maximumf %92, %93 : vector<16x16xf32>
    %95 = arith.truncf %94 : vector<16x16xf32> to vector<16x16xbf16>
    %96 = vector.extract_strided_slice %5 {offsets = [96, 0], sizes = [32, 16], strides = [1, 1]} : vector<144x128xbf16> to vector<32x16xbf16>
    %97 = vector.extract_strided_slice %5 {offsets = [96, 16], sizes = [32, 16], strides = [1, 1]} : vector<144x128xbf16> to vector<32x16xbf16>
    %98 = vector.extract_strided_slice %5 {offsets = [96, 32], sizes = [32, 16], strides = [1, 1]} : vector<144x128xbf16> to vector<32x16xbf16>
    %99 = vector.extract_strided_slice %5 {offsets = [96, 48], sizes = [32, 16], strides = [1, 1]} : vector<144x128xbf16> to vector<32x16xbf16>
    %100 = vector.extract_strided_slice %5 {offsets = [96, 64], sizes = [32, 16], strides = [1, 1]} : vector<144x128xbf16> to vector<32x16xbf16>
    %101 = vector.extract_strided_slice %5 {offsets = [96, 80], sizes = [32, 16], strides = [1, 1]} : vector<144x128xbf16> to vector<32x16xbf16>
    %102 = vector.extract_strided_slice %5 {offsets = [96, 96], sizes = [32, 16], strides = [1, 1]} : vector<144x128xbf16> to vector<32x16xbf16>
    %103 = vector.extract_strided_slice %5 {offsets = [96, 112], sizes = [32, 16], strides = [1, 1]} : vector<144x128xbf16> to vector<32x16xbf16>
    %104 = tpu.concatenate %96, %97, %98, %99, %100, %101, %102, %103 in 0 : vector<32x16xbf16>, vector<32x16xbf16>, vector<32x16xbf16>, vector<32x16xbf16>, vector<32x16xbf16>, vector<32x16xbf16>, vector<32x16xbf16>, vector<32x16xbf16> -> vector<256x16xbf16>
    %cst_19 = arith.constant dense<0.000000e+00> : vector<16x16xf32>
    %105 = tpu.matmul %2, %104, %cst_19 {dimension_numbers = #tpu.dot_dimension_numbers<[1], [0], [0], [1], [0, 0, 1, 1], [], []>} : vector<16x256xbf16>, vector<256x16xbf16>, vector<16x16xf32> -> vector<16x16xf32>
    %106 = vector.broadcast %3 : vector<16x1xf32> to vector<16x16xf32>
    %107 = arith.addf %105, %106 : vector<16x16xf32>
    %cst_20 = arith.constant 0.000000e+00 : f32
    %108 = vector.broadcast %cst_20 : f32 to vector<16x16xf32>
    %109 = arith.maximumf %107, %108 : vector<16x16xf32>
    %110 = arith.truncf %109 : vector<16x16xf32> to vector<16x16xbf16>
    %111 = vector.extract_strided_slice %5 {offsets = [112, 0], sizes = [32, 16], strides = [1, 1]} : vector<144x128xbf16> to vector<32x16xbf16>
    %112 = vector.extract_strided_slice %5 {offsets = [112, 16], sizes = [32, 16], strides = [1, 1]} : vector<144x128xbf16> to vector<32x16xbf16>
    %113 = vector.extract_strided_slice %5 {offsets = [112, 32], sizes = [32, 16], strides = [1, 1]} : vector<144x128xbf16> to vector<32x16xbf16>
    %114 = vector.extract_strided_slice %5 {offsets = [112, 48], sizes = [32, 16], strides = [1, 1]} : vector<144x128xbf16> to vector<32x16xbf16>
    %115 = vector.extract_strided_slice %5 {offsets = [112, 64], sizes = [32, 16], strides = [1, 1]} : vector<144x128xbf16> to vector<32x16xbf16>
    %116 = vector.extract_strided_slice %5 {offsets = [112, 80], sizes = [32, 16], strides = [1, 1]} : vector<144x128xbf16> to vector<32x16xbf16>
    %117 = vector.extract_strided_slice %5 {offsets = [112, 96], sizes = [32, 16], strides = [1, 1]} : vector<144x128xbf16> to vector<32x16xbf16>
    %118 = vector.extract_strided_slice %5 {offsets = [112, 112], sizes = [32, 16], strides = [1, 1]} : vector<144x128xbf16> to vector<32x16xbf16>
    %119 = tpu.concatenate %111, %112, %113, %114, %115, %116, %117, %118 in 0 : vector<32x16xbf16>, vector<32x16xbf16>, vector<32x16xbf16>, vector<32x16xbf16>, vector<32x16xbf16>, vector<32x16xbf16>, vector<32x16xbf16>, vector<32x16xbf16> -> vector<256x16xbf16>
    %cst_21 = arith.constant dense<0.000000e+00> : vector<16x16xf32>
    %120 = tpu.matmul %2, %119, %cst_21 {dimension_numbers = #tpu.dot_dimension_numbers<[1], [0], [0], [1], [0, 0, 1, 1], [], []>} : vector<16x256xbf16>, vector<256x16xbf16>, vector<16x16xf32> -> vector<16x16xf32>
    %121 = vector.broadcast %3 : vector<16x1xf32> to vector<16x16xf32>
    %122 = arith.addf %120, %121 : vector<16x16xf32>
    %cst_22 = arith.constant 0.000000e+00 : f32
    %123 = vector.broadcast %cst_22 : f32 to vector<16x16xf32>
    %124 = arith.maximumf %122, %123 : vector<16x16xf32>
    %125 = arith.truncf %124 : vector<16x16xf32> to vector<16x16xbf16>
    %126 = tpu.concatenate %20, %35, %50, %65, %80, %95, %110, %125 in 0 : vector<16x16xbf16>, vector<16x16xbf16>, vector<16x16xbf16>, vector<16x16xbf16>, vector<16x16xbf16>, vector<16x16xbf16>, vector<16x16xbf16>, vector<16x16xbf16> -> vector<128x16xbf16>
    %c0_23 = arith.constant 0 : index
    %c0_24 = arith.constant 0 : index
    %127 = vector.load %arg5[%c0_23, %c0_24] : memref<16x24xbf16, #tpu.memory_space<vmem>>, vector<16x24xbf16>
    %c0_25 = arith.constant 0 : index
    %c0_26 = arith.constant 0 : index
    %128 = vector.load %arg6[%c0_25, %c0_26] : memref<32x256xbf16, #tpu.memory_space<vmem>>, vector<32x256xbf16>
    %c0_27 = arith.constant 0 : index
    %c0_28 = arith.constant 0 : index
    %129 = vector.load %arg7[%c0_27, %c0_28] : memref<32x1xf32, #tpu.memory_space<vmem>>, vector<32x1xf32>
    %cst_29 = arith.constant dense<0.000000e+00> : vector<128x24xf32>
    %130 = tpu.matmul %126, %127, %cst_29 {dimension_numbers = #tpu.dot_dimension_numbers<[1], [0], [0], [1], [0, 0, 1, 1], [], []>} : vector<128x16xbf16>, vector<16x24xbf16>, vector<128x24xf32> -> vector<128x24xf32>
    %131 = arith.truncf %130 : vector<128x24xf32> to vector<128x24xbf16>
    %132 = vector.extract_strided_slice %131 {offsets = [0, 0], sizes = [64, 6], strides = [1, 1]} : vector<128x24xbf16> to vector<64x6xbf16>
    %133 = vector.extract_strided_slice %131 {offsets = [0, 6], sizes = [64, 6], strides = [1, 1]} : vector<128x24xbf16> to vector<64x6xbf16>
    %134 = vector.extract_strided_slice %131 {offsets = [0, 12], sizes = [64, 6], strides = [1, 1]} : vector<128x24xbf16> to vector<64x6xbf16>
    %135 = vector.extract_strided_slice %131 {offsets = [0, 18], sizes = [64, 6], strides = [1, 1]} : vector<128x24xbf16> to vector<64x6xbf16>
    %136 = tpu.concatenate %132, %133, %134, %135 in 0 : vector<64x6xbf16>, vector<64x6xbf16>, vector<64x6xbf16>, vector<64x6xbf16> -> vector<256x6xbf16>
    %cst_30 = arith.constant dense<0.000000e+00> : vector<32x6xf32>
    %137 = tpu.matmul %128, %136, %cst_30 {dimension_numbers = #tpu.dot_dimension_numbers<[1], [0], [0], [1], [0, 0, 1, 1], [], []>} : vector<32x256xbf16>, vector<256x6xbf16>, vector<32x6xf32> -> vector<32x6xf32>
    %138 = vector.broadcast %129 : vector<32x1xf32> to vector<32x6xf32>
    %139 = arith.addf %137, %138 : vector<32x6xf32>
    %cst_31 = arith.constant 0.000000e+00 : f32
    %140 = vector.broadcast %cst_31 : f32 to vector<32x6xf32>
    %141 = arith.maximumf %139, %140 : vector<32x6xf32>
    %142 = arith.truncf %141 : vector<32x6xf32> to vector<32x6xbf16>
    %143 = vector.extract_strided_slice %131 {offsets = [32, 0], sizes = [64, 6], strides = [1, 1]} : vector<128x24xbf16> to vector<64x6xbf16>
    %144 = vector.extract_strided_slice %131 {offsets = [32, 6], sizes = [64, 6], strides = [1, 1]} : vector<128x24xbf16> to vector<64x6xbf16>
    %145 = vector.extract_strided_slice %131 {offsets = [32, 12], sizes = [64, 6], strides = [1, 1]} : vector<128x24xbf16> to vector<64x6xbf16>
    %146 = vector.extract_strided_slice %131 {offsets = [32, 18], sizes = [64, 6], strides = [1, 1]} : vector<128x24xbf16> to vector<64x6xbf16>
    %147 = tpu.concatenate %143, %144, %145, %146 in 0 : vector<64x6xbf16>, vector<64x6xbf16>, vector<64x6xbf16>, vector<64x6xbf16> -> vector<256x6xbf16>
    %cst_32 = arith.constant dense<0.000000e+00> : vector<32x6xf32>
    %148 = tpu.matmul %128, %147, %cst_32 {dimension_numbers = #tpu.dot_dimension_numbers<[1], [0], [0], [1], [0, 0, 1, 1], [], []>} : vector<32x256xbf16>, vector<256x6xbf16>, vector<32x6xf32> -> vector<32x6xf32>
    %149 = vector.broadcast %129 : vector<32x1xf32> to vector<32x6xf32>
    %150 = arith.addf %148, %149 : vector<32x6xf32>
    %cst_33 = arith.constant 0.000000e+00 : f32
    %151 = vector.broadcast %cst_33 : f32 to vector<32x6xf32>
    %152 = arith.maximumf %150, %151 : vector<32x6xf32>
    %153 = arith.truncf %152 : vector<32x6xf32> to vector<32x6xbf16>
    %154 = vector.extract_strided_slice %131 {offsets = [64, 0], sizes = [64, 6], strides = [1, 1]} : vector<128x24xbf16> to vector<64x6xbf16>
    %155 = vector.extract_strided_slice %131 {offsets = [64, 6], sizes = [64, 6], strides = [1, 1]} : vector<128x24xbf16> to vector<64x6xbf16>
    %156 = vector.extract_strided_slice %131 {offsets = [64, 12], sizes = [64, 6], strides = [1, 1]} : vector<128x24xbf16> to vector<64x6xbf16>
    %157 = vector.extract_strided_slice %131 {offsets = [64, 18], sizes = [64, 6], strides = [1, 1]} : vector<128x24xbf16> to vector<64x6xbf16>
    %158 = tpu.concatenate %154, %155, %156, %157 in 0 : vector<64x6xbf16>, vector<64x6xbf16>, vector<64x6xbf16>, vector<64x6xbf16> -> vector<256x6xbf16>
    %cst_34 = arith.constant dense<0.000000e+00> : vector<32x6xf32>
    %159 = tpu.matmul %128, %158, %cst_34 {dimension_numbers = #tpu.dot_dimension_numbers<[1], [0], [0], [1], [0, 0, 1, 1], [], []>} : vector<32x256xbf16>, vector<256x6xbf16>, vector<32x6xf32> -> vector<32x6xf32>
    %160 = vector.broadcast %129 : vector<32x1xf32> to vector<32x6xf32>
    %161 = arith.addf %159, %160 : vector<32x6xf32>
    %cst_35 = arith.constant 0.000000e+00 : f32
    %162 = vector.broadcast %cst_35 : f32 to vector<32x6xf32>
    %163 = arith.maximumf %161, %162 : vector<32x6xf32>
    %164 = arith.truncf %163 : vector<32x6xf32> to vector<32x6xbf16>
    %165 = tpu.concatenate %142, %153, %164 in 0 : vector<32x6xbf16>, vector<32x6xbf16>, vector<32x6xbf16> -> vector<96x6xbf16>
    %c0_36 = arith.constant 0 : index
    %c0_37 = arith.constant 0 : index
    %166 = vector.load %arg8[%c0_36, %c0_37] : memref<6x6xbf16, #tpu.memory_space<vmem>>, vector<6x6xbf16>
    %c0_38 = arith.constant 0 : index
    %c0_39 = arith.constant 0 : index
    %167 = vector.load %arg9[%c0_38, %c0_39] : memref<32x288xbf16, #tpu.memory_space<vmem>>, vector<32x288xbf16>
    %c0_40 = arith.constant 0 : index
    %c0_41 = arith.constant 0 : index
    %168 = vector.load %arg10[%c0_40, %c0_41] : memref<32x1xf32, #tpu.memory_space<vmem>>, vector<32x1xf32>
    %cst_42 = arith.constant dense<0.000000e+00> : vector<96x6xf32>
    %169 = tpu.matmul %165, %166, %cst_42 {dimension_numbers = #tpu.dot_dimension_numbers<[1], [0], [0], [1], [0, 0, 1, 1], [], []>} : vector<96x6xbf16>, vector<6x6xbf16>, vector<96x6xf32> -> vector<96x6xf32>
    %170 = arith.truncf %169 : vector<96x6xf32> to vector<96x6xbf16>
    %171 = vector.extract_strided_slice %170 {offsets = [0, 0], sizes = [96, 2], strides = [1, 1]} : vector<96x6xbf16> to vector<96x2xbf16>
    %172 = vector.extract_strided_slice %170 {offsets = [0, 2], sizes = [96, 2], strides = [1, 1]} : vector<96x6xbf16> to vector<96x2xbf16>
    %173 = vector.extract_strided_slice %170 {offsets = [0, 4], sizes = [96, 2], strides = [1, 1]} : vector<96x6xbf16> to vector<96x2xbf16>
    %174 = tpu.concatenate %171, %172, %173 in 0 : vector<96x2xbf16>, vector<96x2xbf16>, vector<96x2xbf16> -> vector<288x2xbf16>
    %cst_43 = arith.constant dense<0.000000e+00> : vector<32x2xf32>
    %175 = tpu.matmul %167, %174, %cst_43 {dimension_numbers = #tpu.dot_dimension_numbers<[1], [0], [0], [1], [0, 0, 1, 1], [], []>} : vector<32x288xbf16>, vector<288x2xbf16>, vector<32x2xf32> -> vector<32x2xf32>
    %176 = vector.broadcast %168 : vector<32x1xf32> to vector<32x2xf32>
    %177 = arith.addf %175, %176 : vector<32x2xf32>
    %cst_44 = arith.constant 0.000000e+00 : f32
    %178 = vector.broadcast %cst_44 : f32 to vector<32x2xf32>
    %179 = arith.maximumf %177, %178 : vector<32x2xf32>
    %180 = arith.truncf %179 : vector<32x2xf32> to vector<32x2xbf16>
    %c0_45 = arith.constant 0 : index
    %c0_46 = arith.constant 0 : index
    %181 = vector.load %arg11[%c0_45, %c0_46] : memref<256x32xbf16, #tpu.memory_space<vmem>>, vector<256x32xbf16>
    %c0_47 = arith.constant 0 : index
    %c0_48 = arith.constant 0 : index
    %182 = vector.load %arg12[%c0_47, %c0_48] : memref<256x1xf32, #tpu.memory_space<vmem>>, vector<256x1xf32>
    %cst_49 = arith.constant dense<0.000000e+00> : vector<256x2xf32>
    %183 = tpu.matmul %181, %180, %cst_49 {dimension_numbers = #tpu.dot_dimension_numbers<[1], [0], [0], [1], [0, 0, 1, 1], [], []>} : vector<256x32xbf16>, vector<32x2xbf16>, vector<256x2xf32> -> vector<256x2xf32>
    %184 = vector.broadcast %182 : vector<256x1xf32> to vector<256x2xf32>
    %185 = arith.addf %183, %184 : vector<256x2xf32>
    %cst_50 = arith.constant 0.000000e+00 : f32
    %186 = vector.broadcast %cst_50 : f32 to vector<256x2xf32>
    %187 = arith.maximumf %185, %186 : vector<256x2xf32>
    %188 = arith.truncf %187 : vector<256x2xf32> to vector<256x2xbf16>
    %c0_51 = arith.constant 0 : index
    %c0_52 = arith.constant 0 : index
    %189 = vector.load %arg13[%c0_51, %c0_52] : memref<6x256xbf16, #tpu.memory_space<vmem>>, vector<6x256xbf16>
    %c0_53 = arith.constant 0 : index
    %c0_54 = arith.constant 0 : index
    %190 = vector.load %arg14[%c0_53, %c0_54] : memref<6x1xf32, #tpu.memory_space<vmem>>, vector<6x1xf32>
    %cst_55 = arith.constant dense<0.000000e+00> : vector<6x2xf32>
    %191 = tpu.matmul %189, %188, %cst_55 {dimension_numbers = #tpu.dot_dimension_numbers<[1], [0], [0], [1], [0, 0, 1, 1], [], []>} : vector<6x256xbf16>, vector<256x2xbf16>, vector<6x2xf32> -> vector<6x2xf32>
    %192 = vector.broadcast %190 : vector<6x1xf32> to vector<6x2xf32>
    %193 = arith.addf %191, %192 : vector<6x2xf32>
    %194 = tpu.transpose %193, [1, 0] : vector<6x2xf32> -> vector<2x6xf32>
    %c0_56 = arith.constant 0 : index
    %c0_57 = arith.constant 0 : index
    %195 = vector.load %arg15[%c0_56, %c0_57] : memref<2x6xf32, #tpu.memory_space<vmem>>, vector<2x6xf32>
    tpu.vector_store %arg15[%c0_56, %c0_57], %194 {strides = array<i32>} : memref<2x6xf32, #tpu.memory_space<vmem>>, vector<2x6xf32>,
    return
  }
  func.func @transform_0(%arg0: i32) -> (i32, i32) {
    %c0_i32 = arith.constant 0 : i32
    %c0_i32_0 = arith.constant 0 : i32
    return %c0_i32, %arg0 : i32, i32
  }
  func.func @transform_1(%arg0: i32) -> (i32, i32) {
    %c0_i32 = arith.constant 0 : i32
    %c0_i32_0 = arith.constant 0 : i32
    %c0_i32_1 = arith.constant 0 : i32
    return %c0_i32, %c0_i32_0 : i32, i32
  }
  func.func @transform_2(%arg0: i32) -> (i32, i32) {
    %c0_i32 = arith.constant 0 : i32
    %c0_i32_0 = arith.constant 0 : i32
    %c0_i32_1 = arith.constant 0 : i32
    return %c0_i32, %c0_i32_0 : i32, i32
  }
  func.func @transform_3(%arg0: i32) -> (i32, i32) {
    %c0_i32 = arith.constant 0 : i32
    %c0_i32_0 = arith.constant 0 : i32
    %c0_i32_1 = arith.constant 0 : i32
    return %c0_i32, %c0_i32_0 : i32, i32
  }
  func.func @transform_4(%arg0: i32) -> (i32, i32) {
    %c0_i32 = arith.constant 0 : i32
    %c0_i32_0 = arith.constant 0 : i32
    %c0_i32_1 = arith.constant 0 : i32
    return %c0_i32, %c0_i32_0 : i32, i32
  }
  func.func @transform_5(%arg0: i32) -> (i32, i32) {
    %c0_i32 = arith.constant 0 : i32
    %c0_i32_0 = arith.constant 0 : i32
    %c0_i32_1 = arith.constant 0 : i32
    return %c0_i32, %c0_i32_0 : i32, i32
  }
  func.func @transform_6(%arg0: i32) -> (i32, i32) {
    %c0_i32 = arith.constant 0 : i32
    %c0_i32_0 = arith.constant 0 : i32
    %c0_i32_1 = arith.constant 0 : i32
    return %c0_i32, %c0_i32_0 : i32, i32
  }
  func.func @transform_7(%arg0: i32) -> (i32, i32) {
    %c0_i32 = arith.constant 0 : i32
    %c0_i32_0 = arith.constant 0 : i32
    %c0_i32_1 = arith.constant 0 : i32
    return %c0_i32, %c0_i32_0 : i32, i32
  }
  func.func @transform_8(%arg0: i32) -> (i32, i32) {
    %c0_i32 = arith.constant 0 : i32
    %c0_i32_0 = arith.constant 0 : i32
    %c0_i32_1 = arith.constant 0 : i32
    return %c0_i32, %c0_i32_0 : i32, i32
  }
  func.func @transform_9(%arg0: i32) -> (i32, i32) {
    %c0_i32 = arith.constant 0 : i32
    %c0_i32_0 = arith.constant 0 : i32
    %c0_i32_1 = arith.constant 0 : i32
    return %c0_i32, %c0_i32_0 : i32, i32
  }
  func.func @transform_10(%arg0: i32) -> (i32, i32) {
    %c0_i32 = arith.constant 0 : i32
    %c0_i32_0 = arith.constant 0 : i32
    %c0_i32_1 = arith.constant 0 : i32
    return %c0_i32, %c0_i32_0 : i32, i32
  }
  func.func @transform_11(%arg0: i32) -> (i32, i32) {
    %c0_i32 = arith.constant 0 : i32
    %c0_i32_0 = arith.constant 0 : i32
    %c0_i32_1 = arith.constant 0 : i32
    return %c0_i32, %c0_i32_0 : i32, i32
  }
  func.func @transform_12(%arg0: i32) -> (i32, i32) {
    %c0_i32 = arith.constant 0 : i32
    %c0_i32_0 = arith.constant 0 : i32
    %c0_i32_1 = arith.constant 0 : i32
    return %c0_i32, %c0_i32_0 : i32, i32
  }
  func.func @transform_13(%arg0: i32) -> (i32, i32) {
    %c0_i32 = arith.constant 0 : i32
    %c0_i32_0 = arith.constant 0 : i32
    %c0_i32_1 = arith.constant 0 : i32
    return %c0_i32, %c0_i32_0 : i32, i32
  }
  func.func @transform_14(%arg0: i32) -> (i32, i32) {
    %c0_i32 = arith.constant 0 : i32
    %c0_i32_0 = arith.constant 0 : i32
    return %arg0, %c0_i32 : i32, i32
  }
}

</mosaic_0001>

<bundles_post_ra>
// kernel: dqn_forward.1
= control target key start
LH: loop header
LB: loop body
LE: loop exit
PB: predicated region body
PF: predicated region fallthrough
CT: control target
= control target key end

     0   :  { %v2951_v1 = vmov 0.0   ;;  %vm2952_vm0 = vmmov 0   ;;  %vm180_vm1 = vcmask 1043456   ;;  %vm152_vm2 = vcmask 588800   ;;  %s3738_s0 = inlined_call_operand.vmem [shape: bf16[144,72], index: 0, kind: input, shape index: {}]   ;;  %s3739_s1 = inlined_call_operand.vmem [shape: bf16[72,128], index: 1, kind: input, shape index: {}]   ;;  %s3740_s2 = inlined_call_operand.vmem [shape: bf16[16,256], index: 2, kind: input, shape index: {}]   ;;  %s3741_s3 = inlined_call_operand.vmem [shape: f32[16,1], index: 3, kind: input, shape index: {}]   ;;  %s3742_s4 = inlined_call_operand.vmem [shape: bf16[16,24], index: 4, kind: input, shape index: {}]   ;;  %s3743_s5 = inlined_call_operand.vmem [shape: bf16[32,256], index: 5, kind: input, shape index: {}]   ;;  %s3744_s6 = inlined_call_operand.vmem [shape: f32[32,1], index: 6, kind: input, shape index: {}]   ;;  %s3745_s7 = inlined_call_operand.vmem [shape: bf16[6,6], index: 7, kind: input, shape index: {}]   ;;  %s3746_s8 = inlined_call_operand.vmem [shape: bf16[32,288], index: 8, kind: input, shape index: {}]   ;;  %s3747_s9 = inlined_call_operand.vmem [shape: f32[32,1], index: 9, kind: input, shape index: {}]   ;;  %s3748_s10 = inlined_call_operand.vmem [shape: bf16[256,32], index: 10, kind: input, shape index: {}]   ;;  %s3749_s11 = inlined_call_operand.vmem [shape: f32[256,1], index: 11, kind: input, shape index: {}]   ;;  %s3750_s12 = inlined_call_operand.vmem [shape: bf16[6,256], index: 12, kind: input, shape index: {}]   ;;  %s3751_s13 = inlined_call_operand.vmem [shape: f32[6,1], index: 13, kind: input, shape index: {}]   ;;  %s3752_s14 = inlined_call_operand.hbm [shape: f32[2,6], index: 14, kind: output, shape index: {}]  }
   0x1   :  { %v2877_v0 = vld [vmem:[%s3739_s1] sm:$0xff]   ;;  %2736 = vmatprep.subr.bf16.mxu0 %v2951_v1  ;;  %v2878_v2 = vld [vmem:[%s3739_s1 + $0x8] sm:$0xff]   ;;  %2746 = vmatprep.mubr.msk.bf16.mxu0 %vm2952_vm0, %v2951_v1  ;;  %v2879_v3 = vld [vmem:[%s3739_s1 + $0x10] sm:$0xff]  }
   0x2   :  { %2737 = vmatpush3.bf16.msra.mxu0 %v2877_v0  ;;  %v2880_v4 = vld [vmem:[%s3739_s1 + $0x18] sm:$0xff]   ;;  %v2881_v5 = vld [vmem:[%s3739_s1 + $0x20] ss:$0 sps:$4 sm:$0xff]   ;;  %v2883_v8 = vld [vmem:[%s3738_s0 + $0x8] sm:$0xff]  }
   0x3   :  { %2738 = vmatprep.subr.bf16.mxu0 %v2951_v1  ;;  %v182_v6 = vsel %vm180_vm1, %v2881_v5, 0  ;;  %v2882_v7 = vld [vmem:[%s3738_s0] sm:$0xff]  }
   0x6   :  { %2739 = vmatpush3.bf16.msra.mxu0 %v2878_v2 }
   0x7   :  { %2740 = vmatprep.subr.bf16.mxu0 %v2951_v1 }
   0xa   :  { %2741 = vmatpush3.bf16.msra.mxu0 %v2879_v3 }
   0xb   :  { %2742 = vmatprep.subr.bf16.mxu0 %v2951_v1 }
   0xe   :  { %2743 = vmatpush3.bf16.msra.mxu0 %v2880_v4 }
   0xf   :  { %2744 = vmatprep.subr.bf16.mxu0 %v2951_v1 }
  0x12   :  { %2745 = vmatpush3.bf16.msra.mxu0 %v182_v6 }
  0x15   :  { %2747 = vmatmul.mubr.msk.bf16.vlgmr.msra.gmra.mrb[0].mxu0 %vm152_vm2, %v2882_v7 }
  0x16   :  { %2750 = vmatprep.mubr.msk.bf16.mxu0 %vm2952_vm0, %v2951_v1 }
  0x1d   :  { %2751 = vmatmul.mubr.msk.bf16.gmra.mrb[4].mxu0 %vm152_vm2, %v2883_v8 }
  0x1e   :  { %19 = vsyncpa [#allocation3], 0  ;;  %2754 = vmatprep.mubr.msk.bf16.mxu0 %vm2952_vm0, %v2951_v1  ;;  %v2884_v9 = vld [vmem:[%s3738_s0 + $0x10] sm:$0xff]   ;;  %v2885_v10 = vld [vmem:[%s3738_s0 + $0x18] sm:$0xff]   ;;  %s2953_s24 = smov 48   ;;  %s2954_s25 = smov 64  }
  0x1f   :  { %v2886_v11 = vld [vmem:[%s3738_s0 + $0x20] sm:$0xff]   ;;  %v2887_v12 = vld [vmem:[%s3738_s0 + $0x28] sm:$0xff]   ;;  %v2888_v13 = vld [vmem:[%s3738_s0 + $0x30] sm:$0xff]   ;;  %s2955_s26 = smov 112   ;;  %s2957_s1 = smov 32   ;;  %v2960_v62 = vmov 0  }
  0x20   :  { %v2889_v14 = vld [vmem:[%s3738_s0 + $0x38] sm:$0xff]   ;;  %v2890_v15 = vld [vmem:[%s3738_s0 + $0x40] sm:$0xff]   ;;  %s2956_s0 = smov 96   ;;  %s2958_s27 = smov 80   ;;  %2875 = vset.pattern.permute.xlu1 %v2960_v62  ;;  %2876 = vset.pattern.permute.xlu0 %v2960_v62  ;;  %v79_v7 = vld [vmem:[%s3741_s3 + $0x8] sm:$0xff]  ;;  %vm884_vm3 = vcmask 130048  }
  0x21   :  { %v3133_v33 = vld [vmem:[%s3740_s2 + $0x4] ss:$8 sps:$4 sm:$0xff]   ;;  %s2959_s30 = smov 16   ;;  %s2962_s21 = smov 122   ;;  %vm1331_vm4 = vcmask 1042432   ;;  %vm1312_vm5 = vcmask 48128  }
  0x22   :  { %394 = vmatprep.mubr.bf16.mxu1 %v3133_v33  ;;  %v78_v4 = vld [vmem:[%s3741_s3] sm:$0xff]  ;;  %s2963_s22 = smov 110   ;;  %vm1514_vm6 = vcmask 261120   ;;  %vm2272_vm7 = vcmask 41984  }
  0x25   :  { %2755 = vmatmul.mubr.msk.bf16.gmra.mrb[8].mxu0 %vm152_vm2, %v2884_v9 }
  0x26   :  { %2758 = vmatprep.mubr.msk.bf16.mxu0 %vm2952_vm0, %v2951_v1 }
  0x2d   :  { %2759 = vmatmul.mubr.msk.bf16.gmra.mrb[12].mxu0 %vm152_vm2, %v2885_v10 }
  0x2e   :  { %2762 = vmatprep.mubr.msk.bf16.mxu0 %vm2952_vm0, %v2951_v1 }
  0x35   :  { %2763 = vmatmul.mubr.msk.bf16.gmra.mrb[16].mxu0 %vm152_vm2, %v2886_v11 }
  0x36   :  { %2766 = vmatprep.mubr.msk.bf16.mxu0 %vm2952_vm0, %v2951_v1 }
  0x3d   :  { %2767 = vmatmul.mubr.msk.bf16.gmra.mrb[20].mxu0 %vm152_vm2, %v2887_v12 }
  0x3e   :  { %2770 = vmatprep.mubr.msk.bf16.mxu0 %vm2952_vm0, %v2951_v1 }
  0x45   :  { %2771 = vmatmul.mubr.msk.bf16.gmra.mrb[24].mxu0 %vm152_vm2, %v2888_v13 }
  0x46   :  { %2774 = vmatprep.mubr.msk.bf16.mxu0 %vm2952_vm0, %v2951_v1 }
  0x4d   :  { %2775 = vmatmul.mubr.msk.bf16.gmra.mrb[28].mxu0 %vm152_vm2, %v2889_v14 }
  0x4e   :  { %2778 = vmatprep.mubr.msk.bf16.mxu0 %vm2952_vm0, %v2951_v1 }
  0x55   :  { %2779 = vmatmul.mubr.msk.bf16.gmra.mrb[32].mxu0 %vm152_vm2, %v2890_v15 }
  0x56   :  { %526 = vmatprep.mubr.bf16.mxu0 %v3133_v33 }
  0xe8   :  { %v218_v16 = vpop.f32.mrb[0].mxu0 }
  0xe9   :  { %v2748_v17 = vpop.f32.mrb[1].mxu0 }
  0xea   :  { %v221_v18 = vpop.f32.mrb[2].mxu0 }
  0xeb   :  { %v3102_v19 = vpack.c.bf16 %v221_v18, %v218_v16  ;;  %v2749_v20 = vpop.f32.mrb[3].mxu0  ;;  %v3264_v18 = vld [vmem:[%s3740_s2] ss:$8 sps:$4 sm:$0xff]   ;;  %s2965_s2 = smov 124  }
  0xed   :  { %324 = vrot.lane.b32.xlu1 %v3102_v19, %s2953_s24  ;;  %318 = vrot.lane.b32.xlu0 %v3102_v19, %s2954_s25 }
  0xf0   :  { %v226_v21 = vpop.f32.mrb[4].mxu0 }
  0xf1   :  { %300 = vrot.lane.b32.xlu1 %v3102_v19, %s2955_s26  ;;  %v2752_v22 = vpop.f32.mrb[5].mxu0 }
  0xf2   :  { %v229_v23 = vpop.f32.mrb[6].mxu0 }
  0xf3   :  { %v3110_v24 = vpack.c.bf16 %v229_v23, %v226_v21  ;;  %v2753_v25 = vpop.f32.mrb[7].mxu0 }
  0xf5   :  { %302 = vrot.lane.b32.xlu1 %v3110_v24, %s2955_s26  ;;  %320 = vrot.lane.b32.xlu0 %v3110_v24, %s2954_s25 }
  0xf8   :  { %v234_v26 = vpop.f32.mrb[8].mxu0 }
  0xf9   :  { %306 = vrot.lane.b32.xlu1 %v3102_v19, %s2956_s0  ;;  %326 = vrot.lane.b32.xlu0 %v3110_v24, %s2953_s24  ;;  %v2756_v27 = vpop.f32.mrb[9].mxu0 }
  0xfa   :  { %v237_v28 = vpop.f32.mrb[10].mxu0 }
  0xfb   :  { %v3120_v29 = vpack.c.bf16 %v237_v28, %v234_v26  ;;  %v2757_v30 = vpop.f32.mrb[11].mxu0 }
  0xfd   :  { %308 = vrot.lane.b32.xlu1 %v3110_v24, %s2956_s0  ;;  %330 = vrot.lane.b32.xlu0 %v3102_v19, %s2957_s1 }
 0x100   :  { %v242_v31 = vpop.f32.mrb[12].mxu0 }
 0x101   :  { %312 = vrot.lane.b32.xlu1 %v3102_v19, %s2958_s27  ;;  %332 = vrot.lane.b32.xlu0 %v3110_v24, %s2957_s1  ;;  %v2760_v32 = vpop.f32.mrb[13].mxu0 }
 0x102   :  { %v245_v34 = vpop.f32.mrb[14].mxu0 }
 0x103   :  { %v3135_v35 = vpack.c.bf16 %v245_v34, %v242_v31  ;;  %v2761_v36 = vpop.f32.mrb[15].mxu0 }
 0x105   :  { %314 = vrot.lane.b32.xlu1 %v3110_v24, %s2958_s27  ;;  %336 = vrot.lane.b32.xlu0 %v3102_v19, %s2959_s30 }
 0x108   :  { %v250_v37 = vpop.f32.mrb[16].mxu0 }
 0x109   :  { %338 = vrot.lane.b32.xlu0 %v3110_v24, %s2959_s30  ;;  %419 = vrot.lane.b32.xlu1 %v3120_v29, %s2953_s24  ;;  %v2764_v38 = vpop.f32.mrb[17].mxu0 }
 0x10a   :  { %v253_v39 = vpop.f32.mrb[18].mxu0 }
 0x10b   :  { %v3147_v40 = vpack.c.bf16 %v253_v39, %v250_v37  ;;  %v2765_v41 = vpop.f32.mrb[19].mxu0 }
 0x10d   :  { %422 = vrot.lane.b32.xlu1 %v3120_v29, %s2957_s1  ;;  %416 = vrot.lane.b32.xlu0 %v3120_v29, %s2954_s25 }
 0x110   :  { %v258_v42 = vpop.f32.mrb[20].mxu0 }
 0x111   :  { %425 = vrot.lane.b32.xlu1 %v3120_v29, %s2959_s30  ;;  %407 = vrot.lane.b32.xlu0 %v3120_v29, %s2955_s26  ;;  %v2768_v43 = vpop.f32.mrb[21].mxu0 }
 0x112   :  { %v261_v44 = vpop.f32.mrb[22].mxu0 }
 0x113   :  { %v3157_v45 = vpack.c.bf16 %v261_v44, %v258_v42  ;;  %v2769_v46 = vpop.f32.mrb[23].mxu0 }
 0x115   :  { %410 = vrot.lane.b32.xlu0 %v3120_v29, %s2956_s0  ;;  %482 = vrot.lane.b32.xlu1 %v3135_v35, %s2954_s25 }
 0x118   :  { %v266_v47 = vpop.f32.mrb[24].mxu0 }
 0x119   :  { %413 = vrot.lane.b32.xlu0 %v3120_v29, %s2958_s27  ;;  %485 = vrot.lane.b32.xlu1 %v3135_v35, %s2953_s24  ;;  %v2772_v48 = vpop.f32.mrb[25].mxu0 }
 0x11a   :  { %v269_v49 = vpop.f32.mrb[26].mxu0 }
 0x11b   :  { %v3167_v50 = vpack.c.bf16 %v269_v49, %v266_v47  ;;  %v2773_v51 = vpop.f32.mrb[27].mxu0 }
 0x11d   :  { %551 = vrot.lane.b32.xlu1 %v3147_v40, %s2953_s24  ;;  %548 = vrot.lane.b32.xlu0 %v3147_v40, %s2954_s25 }
 0x120   :  { %v274_v52 = vpop.f32.mrb[28].mxu0 }
 0x121   :  { %488 = vrot.lane.b32.xlu1 %v3135_v35, %s2957_s1  ;;  %473 = vrot.lane.b32.xlu0 %v3135_v35, %s2955_s26  ;;  %v2776_v53 = vpop.f32.mrb[29].mxu0 }
 0x122   :  { %v277_v54 = vpop.f32.mrb[30].mxu0 }
 0x123   :  { %v3177_v55 = vpack.c.bf16 %v277_v54, %v274_v52  ;;  %v2777_v56 = vpop.f32.mrb[31].mxu0 }
 0x125   :  { %554 = vrot.lane.b32.xlu1 %v3147_v40, %s2957_s1  ;;  %539 = vrot.lane.b32.xlu0 %v3147_v40, %s2955_s26 }
 0x128   :  { %v282_v57 = vpop.f32.mrb[32].mxu0 }
 0x129   :  { %491 = vrot.lane.b32.xlu1 %v3135_v35, %s2959_s30  ;;  %476 = vrot.lane.b32.xlu0 %v3135_v35, %s2956_s0  ;;  %v2780_v58 = vpop.f32.mrb[33].mxu0 }
 0x12a   :  { %v285_v59 = vpop.f32.mrb[34].mxu0 }
 0x12b   :  { %v3187_v60 = vpack.c.bf16 %v285_v59, %v282_v57  ;;  %v2781_v61 = vpop.f32.mrb[35].mxu0 }
 0x12d   :  { %557 = vrot.lane.b32.xlu1 %v3147_v40, %s2959_s30  ;;  %542 = vrot.lane.b32.xlu0 %v3147_v40, %s2956_s0 }
 0x131   :  { %479 = vrot.lane.b32.xlu0 %v3135_v35, %s2958_s27  ;;  %614 = vrot.lane.b32.xlu1 %v3157_v45, %s2954_s25 }
 0x135   :  { %545 = vrot.lane.b32.xlu0 %v3147_v40, %s2958_s27  ;;  %617 = vrot.lane.b32.xlu1 %v3157_v45, %s2953_s24 }
 0x139   :  { %680 = vrot.lane.b32.xlu0 %v3167_v50, %s2954_s25  ;;  %683 = vrot.lane.b32.xlu1 %v3167_v50, %s2953_s24 }
 0x13d   :  { %605 = vrot.lane.b32.xlu0 %v3157_v45, %s2955_s26  ;;  %620 = vrot.lane.b32.xlu1 %v3157_v45, %s2957_s1 }
 0x141   :  { %671 = vrot.lane.b32.xlu0 %v3167_v50, %s2955_s26  ;;  %686 = vrot.lane.b32.xlu1 %v3167_v50, %s2957_s1 }
 0x145   :  { %608 = vrot.lane.b32.xlu0 %v3157_v45, %s2956_s0  ;;  %623 = vrot.lane.b32.xlu1 %v3157_v45, %s2959_s30 }
 0x149   :  { %674 = vrot.lane.b32.xlu0 %v3167_v50, %s2956_s0  ;;  %689 = vrot.lane.b32.xlu1 %v3167_v50, %s2959_s30 }
 0x14d   :  { %611 = vrot.lane.b32.xlu0 %v3157_v45, %s2958_s27  ;;  %746 = vrot.lane.b32.xlu1 %v3177_v55, %s2954_s25 }
 0x151   :  { %677 = vrot.lane.b32.xlu0 %v3167_v50, %s2958_s27  ;;  %749 = vrot.lane.b32.xlu1 %v3177_v55, %s2953_s24 }
 0x155   :  { %812 = vrot.lane.b32.xlu0 %v3187_v60, %s2954_s25  ;;  %815 = vrot.lane.b32.xlu1 %v3187_v60, %s2953_s24 }
 0x159   :  { %737 = vrot.lane.b32.xlu0 %v3177_v55, %s2955_s26  ;;  %752 = vrot.lane.b32.xlu1 %v3177_v55, %s2957_s1 }
 0x15d   :  { %803 = vrot.lane.b32.xlu0 %v3187_v60, %s2955_s26  ;;  %818 = vrot.lane.b32.xlu1 %v3187_v60, %s2957_s1 }
 0x15f   :  { %v325_v63 = vpop.permute.xlu1 %324  ;;  %v319_v0 = vpop.permute.xlu0 %318 }
 0x160   :  { %2388 = vmatprep.subr.bf16.mxu1 %v319_v0 }
 0x161   :  { %2389 = vmatpush3.bf16.msra.mxu1 %v3102_v19  ;;  %740 = vrot.lane.b32.xlu0 %v3177_v55, %s2956_s0 }
 0x162   :  { %755 = vrot.lane.b32.xlu1 %v3177_v55, %s2959_s30 }
 0x163   :  { %v301_v1 = vpop.permute.xlu1 %300 }
 0x165   :  { %806 = vrot.lane.b32.xlu0 %v3187_v60, %s2956_s0 }
 0x166   :  { %821 = vrot.lane.b32.xlu1 %v3187_v60, %s2959_s30 }
 0x167   :  { %v303_v2 = vpop.permute.xlu1 %302  ;;  %v321_v3 = vpop.permute.xlu0 %320 }
 0x168   :  { %2390 = vmatprep.subr.bf16.mxu1 %v321_v3 }
 0x169   :  { %2391 = vmatpush3.bf16.msra.mxu1 %v3110_v24  ;;  %743 = vrot.lane.b32.xlu0 %v3177_v55, %s2958_s27 }
 0x16a   :  { %2392 = vmatprep.subr.bf16.mxu1 %v325_v63  ;;  %344 = vperm.xlu1 %2875, %v78_v4  }
 0x16b   :  { %v307_v5 = vpop.permute.xlu1 %306  ;;  %v327_v6 = vpop.permute.xlu0 %326 }
 0x16d   :  { %2393 = vmatpush3.bf16.msra.mxu1 %v301_v1  ;;  %809 = vrot.lane.b32.xlu0 %v3187_v60, %s2958_s27 }
 0x16e   :  { %2394 = vmatprep.subr.bf16.mxu1 %v327_v6 }
 0x16f   :  { %v309_v8 = vpop.permute.xlu1 %308  ;;  %v331_v9 = vpop.permute.xlu0 %330 }
 0x171   :  { %2395 = vmatpush3.bf16.msra.mxu1 %v303_v2  ;;  %349 = vperm.xlu0 %2876, %v79_v7  }
 0x172   :  { %2396 = vmatprep.subr.bf16.mxu1 %v331_v9 }
 0x173   :  { %v313_v10 = vpop.permute.xlu1 %312  ;;  %v333_v11 = vpop.permute.xlu0 %332 }
 0x175   :  { %2397 = vmatpush3.bf16.msra.mxu1 %v307_v5 }
 0x176   :  { %2398 = vmatprep.subr.bf16.mxu1 %v333_v11 }
 0x177   :  { %v315_v12 = vpop.permute.xlu1 %314  ;;  %v337_v13 = vpop.permute.xlu0 %336 }
 0x179   :  { %2399 = vmatpush3.bf16.msra.mxu1 %v309_v8 }
 0x17a   :  { %2400 = vmatprep.subr.bf16.mxu1 %v337_v13 }
 0x17b   :  { %v339_v14 = vpop.permute.xlu0 %338  ;;  %v420_v15 = vpop.permute.xlu1 %419 }
 0x17d   :  { %2401 = vmatpush3.bf16.msra.mxu1 %v313_v10 }
 0x17e   :  { %2402 = vmatprep.subr.bf16.mxu1 %v339_v14 }
 0x17f   :  { %v423_v16 = vpop.permute.xlu1 %422  ;;  %v417_v17 = vpop.permute.xlu0 %416 }
 0x180   :  { %2432 = vmatprep.subr.bf16.mxu0 %v417_v17 }
 0x181   :  { %2403 = vmatpush3.bf16.msra.mxu1 %v315_v12  ;;  %2433 = vmatpush3.bf16.msra.mxu0 %v3120_v29 }
 0x182   :  { %2410 = vmatprep.subr.bf16.mxu1 %v321_v3 }
 0x183   :  { %v426_v19 = vpop.permute.xlu1 %425  ;;  %v408_v20 = vpop.permute.xlu0 %407 }
 0x184   :  { %395 = vmatmul.mubr.bf16.vlgmr.msra.gmra.mrb[0].mxu1 %v3264_v18 }
 0x185   :  { %2411 = vmatpush3.bf16.msra.mxu1 %v3110_v24  ;;  %460 = vmatprep.mubr.bf16.mxu1 %v3133_v33 }
 0x186   :  { %2412 = vmatprep.subr.bf16.mxu1 %v417_v17 }
 0x187   :  { %v411_v21 = vpop.permute.xlu0 %410  ;;  %v483_v22 = vpop.permute.xlu1 %482 }
 0x188   :  { %2434 = vmatprep.subr.bf16.mxu0 %v483_v22 }
 0x189   :  { %2413 = vmatpush3.bf16.msra.mxu1 %v3120_v29  ;;  %2435 = vmatpush3.bf16.msra.mxu0 %v3135_v35 }
 0x18a   :  { %2414 = vmatprep.subr.bf16.mxu1 %v327_v6  ;;  %2436 = vmatprep.subr.bf16.mxu0 %v420_v15 }
 0x18b   :  { %v414_v23 = vpop.permute.xlu0 %413  ;;  %v486_v25 = vpop.permute.xlu1 %485 }
 0x18d   :  { %2415 = vmatpush3.bf16.msra.mxu1 %v303_v2  ;;  %2437 = vmatpush3.bf16.msra.mxu0 %v408_v20 }
 0x18e   :  { %2416 = vmatprep.subr.bf16.mxu1 %v420_v15  ;;  %2438 = vmatprep.subr.bf16.mxu0 %v486_v25 }
 0x18f   :  { %v552_v26 = vpop.permute.xlu1 %551  ;;  %v549_v24 = vpop.permute.xlu0 %548 }
 0x191   :  { %2417 = vmatpush3.bf16.msra.mxu1 %v408_v20 }
 0x192   :  { %2418 = vmatprep.subr.bf16.mxu1 %v333_v11 }
 0x193   :  { %v489_v27 = vpop.permute.xlu1 %488  ;;  %v474_v28 = vpop.permute.xlu0 %473 }
 0x194   :  { %2439 = vmatpush3.bf16.msra.mxu0 %v474_v28 }
 0x195   :  { %2419 = vmatpush3.bf16.msra.mxu1 %v309_v8  ;;  %2440 = vmatprep.subr.bf16.mxu0 %v423_v16 }
 0x196   :  { %2420 = vmatprep.subr.bf16.mxu1 %v423_v16 }
 0x197   :  { %v555_v29 = vpop.permute.xlu1 %554  ;;  %v540_v30 = vpop.permute.xlu0 %539 }
 0x198   :  { %2441 = vmatpush3.bf16.msra.mxu0 %v411_v21 }
 0x199   :  { %2421 = vmatpush3.bf16.msra.mxu1 %v411_v21  ;;  %2442 = vmatprep.subr.bf16.mxu0 %v489_v27 }
 0x19a   :  { %2422 = vmatprep.subr.bf16.mxu1 %v339_v14 }
 0x19b   :  { %v492_v31 = vpop.permute.xlu1 %491  ;;  %v477_v32 = vpop.permute.xlu0 %476 }
 0x19c   :  { %2443 = vmatpush3.bf16.msra.mxu0 %v477_v32 }
 0x19d   :  { %2423 = vmatpush3.bf16.msra.mxu1 %v315_v12  ;;  %2444 = vmatprep.subr.bf16.mxu0 %v426_v19 }
 0x19e   :  { %2424 = vmatprep.subr.bf16.mxu1 %v426_v19 }
 0x19f   :  { %v558_v34 = vpop.permute.xlu1 %557  ;;  %v543_v36 = vpop.permute.xlu0 %542 }
 0x1a0   :  { %2445 = vmatpush3.bf16.msra.mxu0 %v414_v23 }
 0x1a1   :  { %2425 = vmatpush3.bf16.msra.mxu1 %v414_v23  ;;  %2446 = vmatprep.subr.bf16.mxu0 %v492_v31 }
 0x1a2   :  { %2454 = vmatprep.subr.bf16.mxu1 %v483_v22 }
 0x1a3   :  { %v480_v37 = vpop.permute.xlu0 %479  ;;  %v615_v38 = vpop.permute.xlu1 %614 }
 0x1a4   :  { %461 = vmatmul.mubr.bf16.vlgmr.msra.gmra.mrb[4].mxu1 %v3264_v18  ;;  %2447 = vmatpush3.bf16.msra.mxu0 %v480_v37 }
 0x1a5   :  { %2455 = vmatpush3.bf16.msra.mxu1 %v3135_v35  ;;  %2476 = vmatprep.subr.bf16.mxu0 %v549_v24 }
 0x1a6   :  { %2456 = vmatprep.subr.bf16.mxu1 %v549_v24  ;;  %592 = vmatprep.mubr.bf16.mxu1 %v3133_v33 }
 0x1a7   :  { %v546_v39 = vpop.permute.xlu0 %545  ;;  %527 = vmatmul.mubr.bf16.vlgmr.msra.gmra.mrb[36].mxu0 %v3264_v18  ;;  %v618_v41 = vpop.permute.xlu1 %617 }
 0x1a8   :  { %2477 = vmatpush3.bf16.msra.mxu0 %v3147_v40  ;;  %658 = vmatprep.mubr.bf16.mxu0 %v3133_v33 }
 0x1a9   :  { %2457 = vmatpush3.bf16.msra.mxu1 %v3147_v40  ;;  %2478 = vmatprep.subr.bf16.mxu0 %v615_v38 }
 0x1aa   :  { %2458 = vmatprep.subr.bf16.mxu1 %v486_v25 }
 0x1ab   :  { %v681_v42 = vpop.permute.xlu0 %680  ;;  %v684_v43 = vpop.permute.xlu1 %683 }
 0x1ac   :  { %2479 = vmatpush3.bf16.msra.mxu0 %v3157_v45 }
 0x1ad   :  { %2459 = vmatpush3.bf16.msra.mxu1 %v474_v28  ;;  %2480 = vmatprep.subr.bf16.mxu0 %v552_v26 }
 0x1ae   :  { %2460 = vmatprep.subr.bf16.mxu1 %v552_v26 }
 0x1af   :  { %v606_v35 = vpop.permute.xlu0 %605  ;;  %v621_v44 = vpop.permute.xlu1 %620 }
 0x1b0   :  { %2481 = vmatpush3.bf16.msra.mxu0 %v540_v30 }
 0x1b1   :  { %2461 = vmatpush3.bf16.msra.mxu1 %v540_v30  ;;  %2482 = vmatprep.subr.bf16.mxu0 %v618_v41 }
 0x1b2   :  { %2462 = vmatprep.subr.bf16.mxu1 %v489_v27 }
 0x1b3   :  { %v672_v46 = vpop.permute.xlu0 %671  ;;  %v687_v47 = vpop.permute.xlu1 %686 }
 0x1b4   :  { %2483 = vmatpush3.bf16.msra.mxu0 %v606_v35 }
 0x1b5   :  { %2463 = vmatpush3.bf16.msra.mxu1 %v477_v32  ;;  %2484 = vmatprep.subr.bf16.mxu0 %v555_v29 }
 0x1b6   :  { %2464 = vmatprep.subr.bf16.mxu1 %v555_v29 }
 0x1b7   :  { %v609_v40 = vpop.permute.xlu0 %608  ;;  %v624_v48 = vpop.permute.xlu1 %623 }
 0x1b8   :  { %2485 = vmatpush3.bf16.msra.mxu0 %v543_v36 }
 0x1b9   :  { %2465 = vmatpush3.bf16.msra.mxu1 %v543_v36  ;;  %2486 = vmatprep.subr.bf16.mxu0 %v621_v44 }
 0x1ba   :  { %2466 = vmatprep.subr.bf16.mxu1 %v492_v31 }
 0x1bb   :  { %v675_v49 = vpop.permute.xlu0 %674  ;;  %v690_v51 = vpop.permute.xlu1 %689 }
 0x1bc   :  { %2487 = vmatpush3.bf16.msra.mxu0 %v609_v40 }
 0x1bd   :  { %2467 = vmatpush3.bf16.msra.mxu1 %v480_v37  ;;  %2488 = vmatprep.subr.bf16.mxu0 %v558_v34 }
 0x1be   :  { %2468 = vmatprep.subr.bf16.mxu1 %v558_v34 }
 0x1bf   :  { %v612_v52 = vpop.permute.xlu0 %611  ;;  %v747_v53 = vpop.permute.xlu1 %746 }
 0x1c0   :  { %2489 = vmatpush3.bf16.msra.mxu0 %v546_v39 }
 0x1c1   :  { %2469 = vmatpush3.bf16.msra.mxu1 %v546_v39  ;;  %2490 = vmatprep.subr.bf16.mxu0 %v624_v48 }
 0x1c2   :  { %2498 = vmatprep.subr.bf16.mxu1 %v615_v38 }
 0x1c3   :  { %v678_v54 = vpop.permute.xlu0 %677  ;;  %v750_v57 = vpop.permute.xlu1 %749 }
 0x1c4   :  { %593 = vmatmul.mubr.bf16.vlgmr.msra.gmra.mrb[8].mxu1 %v3264_v18  ;;  %2491 = vmatpush3.bf16.msra.mxu0 %v612_v52 }
 0x1c5   :  { %2499 = vmatpush3.bf16.msra.mxu1 %v3157_v45  ;;  %2520 = vmatprep.subr.bf16.mxu0 %v681_v42 }
 0x1c6   :  { %2500 = vmatprep.subr.bf16.mxu1 %v681_v42  ;;  %724 = vmatprep.mubr.bf16.mxu1 %v3133_v33 }
 0x1c7   :  { %659 = vmatmul.mubr.bf16.vlgmr.msra.gmra.mrb[40].mxu0 %v3264_v18  ;;  %v813_v56 = vpop.permute.xlu0 %812  ;;  %v816_v45 = vpop.permute.xlu1 %815 }
 0x1c8   :  { %2521 = vmatpush3.bf16.msra.mxu0 %v3167_v50  ;;  %790 = vmatprep.mubr.bf16.mxu0 %v3133_v33 }
 0x1c9   :  { %2501 = vmatpush3.bf16.msra.mxu1 %v3167_v50  ;;  %2522 = vmatprep.subr.bf16.mxu0 %v747_v53 }
 0x1ca   :  { %2502 = vmatprep.subr.bf16.mxu1 %v618_v41 }
 0x1cb   :  { %v738_v58 = vpop.permute.xlu0 %737  ;;  %v753_v61 = vpop.permute.xlu1 %752 }
 0x1cc   :  { %2523 = vmatpush3.bf16.msra.mxu0 %v3177_v55 }
 0x1cd   :  { %2503 = vmatpush3.bf16.msra.mxu1 %v606_v35  ;;  %2524 = vmatprep.subr.bf16.mxu0 %v684_v43 }
 0x1ce   :  { %2504 = vmatprep.subr.bf16.mxu1 %v684_v43 }
 0x1cf   :  { %v804_v59 = vpop.permute.xlu0 %803  ;;  %v819_v62 = vpop.permute.xlu1 %818 }
 0x1d0   :  { %2525 = vmatpush3.bf16.msra.mxu0 %v672_v46 }
 0x1d1   :  { %2505 = vmatpush3.bf16.msra.mxu1 %v672_v46  ;;  %2526 = vmatprep.subr.bf16.mxu0 %v750_v57 }
 0x1d2   :  { %2506 = vmatprep.subr.bf16.mxu1 %v621_v44 }
 0x1d3   :  { %v741_v50 = vpop.permute.xlu0 %740 }
 0x1d4   :  { %2527 = vmatpush3.bf16.msra.mxu0 %v738_v58  ;;  %v756_v0 = vpop.permute.xlu1 %755 }
 0x1d5   :  { %2507 = vmatpush3.bf16.msra.mxu1 %v609_v40  ;;  %2528 = vmatprep.subr.bf16.mxu0 %v687_v47 }
 0x1d6   :  { %2508 = vmatprep.subr.bf16.mxu1 %v687_v47 }
 0x1d7   :  { %v807_v63 = vpop.permute.xlu0 %806 }
 0x1d8   :  { %2529 = vmatpush3.bf16.msra.mxu0 %v675_v49  ;;  %v822_v2 = vpop.permute.xlu1 %821 }
 0x1d9   :  { %2509 = vmatpush3.bf16.msra.mxu1 %v675_v49  ;;  %2530 = vmatprep.subr.bf16.mxu0 %v753_v61 }
 0x1da   :  { %2510 = vmatprep.subr.bf16.mxu1 %v624_v48 }
 0x1db   :  { %v744_v1 = vpop.permute.xlu0 %743 }
 0x1dc   :  { %2531 = vmatpush3.bf16.msra.mxu0 %v741_v50 }
 0x1dd   :  { %2511 = vmatpush3.bf16.msra.mxu1 %v612_v52  ;;  %2532 = vmatprep.subr.bf16.mxu0 %v690_v51 }
 0x1de   :  { %2512 = vmatprep.subr.bf16.mxu1 %v690_v51 }
 0x1e0   :  { %2533 = vmatpush3.bf16.msra.mxu0 %v678_v54 }
 0x1e1   :  { %2513 = vmatpush3.bf16.msra.mxu1 %v678_v54  ;;  %2534 = vmatprep.subr.bf16.mxu0 %v756_v0 }
 0x1e2   :  { %2542 = vmatprep.subr.bf16.mxu1 %v747_v53 }
 0x1e4   :  { %725 = vmatmul.mubr.bf16.vlgmr.msra.gmra.mrb[12].mxu1 %v3264_v18  ;;  %2535 = vmatpush3.bf16.msra.mxu0 %v744_v1 }
 0x1e5   :  { %2543 = vmatpush3.bf16.msra.mxu1 %v3177_v55  ;;  %856 = vmatprep.mubr.bf16.mxu1 %v3133_v33  ;;  %v2894_v33 = vld [vmem:[%s3742_s4] sm:$0xff]   ;;  %v810_v55 = vpop.permute.xlu0 %809  ;;  %s2961_s4 = smov 116  }
 0x1e6   :  { %2544 = vmatprep.subr.bf16.mxu1 %v813_v56  ;;  %2782 = vmatprep.subr.bf16.mxu0 %v2894_v33 }
 0x1e7   :  { %791 = vmatmul.mubr.bf16.vlgmr.msra.gmra.mrb[44].mxu0 %v3264_v18 }
 0x1e8   :  { %2783 = vmatpush3.bf16.msra.mxu0 %v2894_v33 }
 0x1e9   :  { %2545 = vmatpush3.bf16.msra.mxu1 %v3187_v60  ;;  %v3297_v4 = vpop.permute.xlu1 %344 }
 0x1ea   :  { %2546 = vmatprep.subr.bf16.mxu1 %v750_v57 }
 0x1ed   :  { %2547 = vmatpush3.bf16.msra.mxu1 %v738_v58 }
 0x1ee   :  { %2548 = vmatprep.subr.bf16.mxu1 %v816_v45 }
 0x1f0   :  { %v3299_v8 = vpop.permute.xlu0 %349 }
 0x1f1   :  { %2549 = vmatpush3.bf16.msra.mxu1 %v804_v59 }
 0x1f2   :  { %2550 = vmatprep.subr.bf16.mxu1 %v753_v61 }
 0x1f5   :  { %2551 = vmatpush3.bf16.msra.mxu1 %v741_v50 }
 0x1f6   :  { %2552 = vmatprep.subr.bf16.mxu1 %v819_v62 }
 0x1f9   :  { %2553 = vmatpush3.bf16.msra.mxu1 %v807_v63 }
 0x1fa   :  { %2554 = vmatprep.subr.bf16.mxu1 %v756_v0 }
 0x1fd   :  { %2555 = vmatpush3.bf16.msra.mxu1 %v744_v1 }
 0x1fe   :  { %2556 = vmatprep.subr.bf16.mxu1 %v822_v2 }
 0x201   :  { %2557 = vmatpush3.bf16.msra.mxu1 %v810_v55 }
 0x204   :  { %857 = vmatmul.mubr.bf16.vlgmr.msra.gmra.mrb[16].mxu1 %v3264_v18 }
 0x257   :  { %v2404_v60 = vpop.f32.mrb[0].mxu1 }
 0x258   :  { %v2405_v3 = vpop.f32.mrb[1].mxu1 }
 0x259   :  { %v2406_v5 = vadd.f32 %v2405_v3, %v2404_v60  ;;  %v2407_v6 = vpop.f32.mrb[2].mxu1 }
 0x25a   :  { %v2408_v7 = vpop.f32.mrb[3].mxu1 }
 0x25b   :  { %v2409_v9 = vadd.f32 %v2408_v7, %v2407_v6  ;;  %v397_v10 = vadd.f32 %v2406_v5, %v3297_v4 }
 0x25d   :  { %v400_v11 = vadd.f32 %v2409_v9, %v3299_v8  ;;  %v403_v12 = vmax.f32 %v397_v10, 0.0 }
 0x25f   :  { %v404_v13 = vmax.f32 %v400_v11, 0.0 }
 0x261   :  { %v405_v14 = vpack.c.bf16 %v404_v13, %v403_v12 }
 0x263   :  { %2784 = vmatprep.mubr.msk.bf16.mxu0 %vm884_vm3, %v405_v14 }
 0x277   :  { %v2426_v15 = vpop.f32.mrb[4].mxu1 }
 0x278   :  { %v2427_v16 = vpop.f32.mrb[5].mxu1 }
 0x279   :  { %v2428_v17 = vadd.f32 %v2427_v16, %v2426_v15  ;;  %v2429_v18 = vpop.f32.mrb[6].mxu1 }
 0x27a   :  { %v2430_v19 = vpop.f32.mrb[7].mxu1  ;;  %v2448_v20 = vpop.f32.mrb[36].mxu0 }
 0x27b   :  { %v463_v21 = vadd.f32 %v2428_v17, %v3297_v4  ;;  %v2431_v22 = vadd.f32 %v2430_v19, %v2429_v18  ;;  %v2449_v23 = vpop.f32.mrb[37].mxu0 }
 0x27c   :  { %v2450_v25 = vadd.f32 %v2449_v23, %v2448_v20  ;;  %v2451_v26 = vpop.f32.mrb[38].mxu0 }
 0x27d   :  { %v466_v24 = vadd.f32 %v2431_v22, %v3299_v8  ;;  %v2452_v27 = vpop.f32.mrb[39].mxu0  ;;  %v469_v30 = vmax.f32 %v463_v21, 0.0 }
 0x27e   :  { %v529_v28 = vadd.f32 %v2450_v25, %v3297_v4  ;;  %v2453_v29 = vadd.f32 %v2452_v27, %v2451_v26 }
 0x27f   :  { %v470_v31 = vmax.f32 %v466_v24, 0.0 }
 0x280   :  { %v535_v32 = vmax.f32 %v529_v28, 0.0  ;;  %v532_v34 = vadd.f32 %v2453_v29, %v3299_v8 }
 0x281   :  { %v471_v36 = vpack.c.bf16 %v470_v31, %v469_v30 }
 0x282   :  { %v536_v37 = vmax.f32 %v532_v34, 0.0 }
 0x283   :  { %2785 = vmatmul.mubr.msk.bf16.vlgmr.msra.gmra.mrb[48].mxu0 %vm884_vm3, %v471_v36 }
 0x284   :  { %v537_v38 = vpack.c.bf16 %v536_v37, %v535_v32 }
 0x286   :  { %2788 = vmatprep.mubr.msk.bf16.mxu0 %vm884_vm3, %v537_v38 }
 0x297   :  { %v2470_v39 = vpop.f32.mrb[8].mxu1 }
 0x298   :  { %v2471_v41 = vpop.f32.mrb[9].mxu1 }
 0x299   :  { %v2472_v42 = vadd.f32 %v2471_v41, %v2470_v39  ;;  %v2473_v43 = vpop.f32.mrb[10].mxu1 }
 0x29a   :  { %v2474_v35 = vpop.f32.mrb[11].mxu1  ;;  %v2492_v44 = vpop.f32.mrb[40].mxu0 }
 0x29b   :  { %v595_v46 = vadd.f32 %v2472_v42, %v3297_v4  ;;  %v2475_v47 = vadd.f32 %v2474_v35, %v2473_v43  ;;  %v2493_v40 = vpop.f32.mrb[41].mxu0  ;;  %v3339_v43 = vld [vmem:[%s3743_s5 + $0x4] ss:$8 sps:$4 sm:$0xff]  }
 0x29c   :  { %v2494_v48 = vadd.f32 %v2493_v40, %v2492_v44  ;;  %v2495_v49 = vpop.f32.mrb[42].mxu0  ;;  %1126 = vmatprep.mubr.bf16.mxu1 %v3339_v43 }
 0x29d   :  { %v598_v51 = vadd.f32 %v2475_v47, %v3299_v8  ;;  %v2496_v52 = vpop.f32.mrb[43].mxu0  ;;  %v601_v56 = vmax.f32 %v595_v46, 0.0 }
 0x29e   :  { %v661_v53 = vadd.f32 %v2494_v48, %v3297_v4  ;;  %v2497_v54 = vadd.f32 %v2496_v52, %v2495_v49 }
 0x29f   :  { %v602_v57 = vmax.f32 %v598_v51, 0.0 }
 0x2a0   :  { %v667_v58 = vmax.f32 %v661_v53, 0.0  ;;  %v664_v45 = vadd.f32 %v2497_v54, %v3299_v8 }
 0x2a1   :  { %v603_v59 = vpack.c.bf16 %v602_v57, %v601_v56  ;;  %v875_v57 = vld [vmem:[%s3744_s6 + $0x8] sm:$0xff] }
 0x2a2   :  { %v668_v61 = vmax.f32 %v664_v45, 0.0 }
 0x2a3   :  { %2789 = vmatmul.mubr.msk.bf16.gmra.mrb[52].mxu0 %vm884_vm3, %v603_v59  ;;  %v877_v59 = vld [vmem:[%s3744_s6 + $0x18] sm:$0xff] }
 0x2a4   :  { %v669_v50 = vpack.c.bf16 %v668_v61, %v667_v58  ;;  %v874_v58 = vld [vmem:[%s3744_s6] sm:$0xff]  ;;  %v876_v61 = vld [vmem:[%s3744_s6 + $0x10] sm:$0xff] }
 0x2a6   :  { %2792 = vmatprep.mubr.msk.bf16.mxu0 %vm884_vm3, %v669_v50 }
 0x2b7   :  { %v2514_v62 = vpop.f32.mrb[12].mxu1 }
 0x2b8   :  { %v2515_v63 = vpop.f32.mrb[13].mxu1 }
 0x2b9   :  { %v2516_v0 = vadd.f32 %v2515_v63, %v2514_v62  ;;  %v2517_v1 = vpop.f32.mrb[14].mxu1 }
 0x2ba   :  { %v2518_v2 = vpop.f32.mrb[15].mxu1  ;;  %v2536_v33 = vpop.f32.mrb[44].mxu0 }
 0x2bb   :  { %v727_v55 = vadd.f32 %v2516_v0, %v3297_v4  ;;  %v2519_v60 = vadd.f32 %v2518_v2, %v2517_v1  ;;  %v2537_v3 = vpop.f32.mrb[45].mxu0 }
 0x2bc   :  { %v2538_v5 = vadd.f32 %v2537_v3, %v2536_v33  ;;  %v2539_v6 = vpop.f32.mrb[46].mxu0 }
 0x2bd   :  { %v730_v7 = vadd.f32 %v2519_v60, %v3299_v8  ;;  %v2540_v9 = vpop.f32.mrb[47].mxu0  ;;  %v733_v12 = vmax.f32 %v727_v55, 0.0 }
 0x2be   :  { %v793_v10 = vadd.f32 %v2538_v5, %v3297_v4  ;;  %v2541_v11 = vadd.f32 %v2540_v9, %v2539_v6  ;;  %v2895_v6 = vld [vmem:[%s3743_s5] ss:$8 sps:$4 sm:$0xff]   ;;  %v2900_v9 = vld [vmem:[%s3743_s5 + $0x10] ss:$8 sps:$4 sm:$0xff]  }
 0x2bf   :  { %v734_v13 = vmax.f32 %v730_v7, 0.0  ;;  %v2898_v7 = vld [vmem:[%s3743_s5 + $0x14] ss:$8 sps:$4 sm:$0xff]  }
 0x2c0   :  { %v796_v14 = vadd.f32 %v2541_v11, %v3299_v8  ;;  %v799_v16 = vmax.f32 %v793_v10, 0.0 }
 0x2c1   :  { %v735_v15 = vpack.c.bf16 %v734_v13, %v733_v12 }
 0x2c2   :  { %v800_v17 = vmax.f32 %v796_v14, 0.0 }
 0x2c3   :  { %2793 = vmatmul.mubr.msk.bf16.gmra.mrb[56].mxu0 %vm884_vm3, %v735_v15 }
 0x2c4   :  { %v801_v18 = vpack.c.bf16 %v800_v17, %v799_v16 }
 0x2c6   :  { %2796 = vmatprep.mubr.msk.bf16.mxu0 %vm884_vm3, %v801_v18 }
 0x2d7   :  { %v2558_v19 = vpop.f32.mrb[16].mxu1 }
 0x2d8   :  { %v2559_v20 = vpop.f32.mrb[17].mxu1 }
 0x2d9   :  { %v2560_v21 = vadd.f32 %v2559_v20, %v2558_v19  ;;  %v2561_v22 = vpop.f32.mrb[18].mxu1 }
 0x2da   :  { %v2562_v23 = vpop.f32.mrb[19].mxu1 }
 0x2db   :  { %v859_v25 = vadd.f32 %v2560_v21, %v3297_v4  ;;  %v2563_v26 = vadd.f32 %v2562_v23, %v2561_v22  ;;  %v1299_v22 = vld [vmem:[%s3745_s7] sm:$0x7]  ;;  %s2964_s7 = smov 126  }
 0x2dc   :  { %v1333_v23 = vsel %vm1331_vm4, %v1299_v22, 0 }
 0x2dd   :  { %v862_v24 = vadd.f32 %v2563_v26, %v3299_v8  ;;  %v865_v27 = vmax.f32 %v859_v25, 0.0 }
 0x2df   :  { %v866_v28 = vmax.f32 %v862_v24, 0.0 }
 0x2e1   :  { %v867_v29 = vpack.c.bf16 %v866_v28, %v865_v27 }
 0x2e3   :  { %2797 = vmatmul.mubr.msk.bf16.gmra.mrb[60].mxu0 %vm884_vm3, %v867_v29 }
 0x2e4   :  { %1201 = vmatprep.mubr.bf16.mxu0 %v3339_v43 }
 0x356   :  { %v2786_v30 = vpop.f32.mrb[48].mxu0 }
 0x357   :  { %v943_v31 = vpop.f32.mrb[49].mxu0 }
 0x358   :  { %v2787_v32 = vpop.f32.mrb[50].mxu0 }
 0x359   :  { %v1007_v34 = vpack.c.bf16 %v2787_v32, %v2786_v30  ;;  %v946_v36 = vpop.f32.mrb[51].mxu0 }
 0x35a   :  { %v1006_v37 = vpack.c.bf16 %v946_v36, %v943_v31 }
 0x35c   :  { %1030 = vrot.lane.b32.xlu1 %v1006_v37, %s2961_s4 }
 0x360   :  { %1032 = vrot.lane.b32.xlu1 %v1007_v34, %s2961_s4 }
 0x376   :  { %v2790_v4 = vpop.f32.mrb[52].mxu0 }
 0x377   :  { %v959_v38 = vpop.f32.mrb[53].mxu0 }
 0x378   :  { %v2791_v39 = vpop.f32.mrb[54].mxu0 }
 0x379   :  { %v3327_v8 = vpack.c.bf16 %v2791_v39, %v2790_v4  ;;  %v962_v41 = vpop.f32.mrb[55].mxu0 }
 0x37a   :  { %v1008_v42 = vpack.c.bf16 %v962_v41, %v959_v38 }
 0x37b   :  { %1036 = vrot.lane.b32.xlu1 %v3327_v8, %s2961_s4 }
 0x37c   :  { %1034 = vrot.lane.b32.xlu0 %v1008_v42, %s2961_s4 }
 0x37f   :  { %1018 = vrot.lane.b32.xlu1 %v1006_v37, %s2962_s21 }
 0x380   :  { %1042 = vrot.lane.b32.xlu0 %v1006_v37, %s2963_s22 }
 0x383   :  { %1020 = vrot.lane.b32.xlu1 %v1007_v34, %s2962_s21 }
 0x384   :  { %1044 = vrot.lane.b32.xlu0 %v1007_v34, %s2963_s22 }
 0x387   :  { %1022 = vrot.lane.b32.xlu1 %v1008_v42, %s2962_s21 }
 0x388   :  { %1046 = vrot.lane.b32.xlu0 %v1008_v42, %s2963_s22 }
 0x38b   :  { %1024 = vrot.lane.b32.xlu1 %v3327_v8, %s2962_s21 }
 0x38c   :  { %1048 = vrot.lane.b32.xlu0 %v3327_v8, %s2963_s22 }
 0x396   :  { %v2794_v35 = vpop.f32.mrb[56].mxu0 }
 0x397   :  { %v975_v44 = vpop.f32.mrb[57].mxu0 }
 0x398   :  { %v2795_v46 = vpop.f32.mrb[58].mxu0 }
 0x399   :  { %v3349_v47 = vpack.c.bf16 %v2795_v46, %v2794_v35  ;;  %v978_v40 = vpop.f32.mrb[59].mxu0 }
 0x39a   :  { %v3351_v48 = vpack.c.bf16 %v978_v40, %v975_v44 }
 0x39b   :  { %1159 = vrot.lane.b32.xlu1 %v3349_v47, %s2961_s4 }
 0x39c   :  { %1157 = vrot.lane.b32.xlu0 %v3351_v48, %s2961_s4 }
 0x3b6   :  { %v2798_v49 = vpop.f32.mrb[60].mxu0 }
 0x3b7   :  { %v991_v51 = vpop.f32.mrb[61].mxu0 }
 0x3b8   :  { %v2799_v52 = vpop.f32.mrb[62].mxu0 }
 0x3b9   :  { %v3357_v53 = vpack.c.bf16 %v2799_v52, %v2798_v49  ;;  %v994_v54 = vpop.f32.mrb[63].mxu0 }
 0x3ba   :  { %v3359_v56 = vpack.c.bf16 %v994_v54, %v991_v51 }
 0x3bb   :  { %1234 = vrot.lane.b32.xlu1 %v3357_v53, %s2961_s4 }
 0x3bc   :  { %1232 = vrot.lane.b32.xlu0 %v3359_v56, %s2961_s4 }
 0x3bf   :  { %1151 = vrot.lane.b32.xlu1 %v3351_v48, %s2962_s21 }
 0x3c0   :  { %1163 = vrot.lane.b32.xlu0 %v3351_v48, %s2963_s22 }
 0x3c3   :  { %1153 = vrot.lane.b32.xlu1 %v3349_v47, %s2962_s21 }
 0x3c4   :  { %1165 = vrot.lane.b32.xlu0 %v3349_v47, %s2963_s22 }
 0x3c7   :  { %1226 = vrot.lane.b32.xlu1 %v3359_v56, %s2962_s21 }
 0x3c8   :  { %1238 = vrot.lane.b32.xlu0 %v3359_v56, %s2963_s22 }
 0x3cb   :  { %1228 = vrot.lane.b32.xlu1 %v3357_v53, %s2962_s21 }
 0x3cc   :  { %1240 = vrot.lane.b32.xlu0 %v3357_v53, %s2963_s22 }
 0x3ce   :  { %v1031_v45 = vpop.permute.xlu1 %1030 }
 0x3cf   :  { %2573 = vmatprep.subr.bf16.mxu1 %v1031_v45  ;;  %1061 = vperm.xlu1 %2875, %v875_v57  }
 0x3d0   :  { %2574 = vmatpush3.bf16.msra.mxu1 %v1006_v37  ;;  %1056 = vperm.xlu0 %2876, %v874_v58  }
 0x3d2   :  { %v1033_v50 = vpop.permute.xlu1 %1032 }
 0x3d3   :  { %2575 = vmatprep.subr.bf16.mxu1 %v1033_v50  ;;  %1071 = vperm.xlu1 %2875, %v877_v59  }
 0x3d4   :  { %2576 = vmatpush3.bf16.msra.mxu1 %v1007_v34  ;;  %1066 = vperm.xlu0 %2876, %v876_v61  }
 0x3ed   :  { %v1037_v62 = vpop.permute.xlu1 %1036 }
 0x3ee   :  { %v1035_v63 = vpop.permute.xlu0 %1034 }
 0x3ef   :  { %2577 = vmatprep.subr.bf16.mxu1 %v1035_v63  ;;  %2601 = vmatprep.subr.bf16.mxu0 %v1035_v63 }
 0x3f0   :  { %2578 = vmatpush3.bf16.msra.mxu1 %v1008_v42  ;;  %2602 = vmatpush3.bf16.msra.mxu0 %v1008_v42 }
 0x3f1   :  { %v1019_v0 = vpop.permute.xlu1 %1018  ;;  %2579 = vmatprep.subr.bf16.mxu1 %v1037_v62  ;;  %2603 = vmatprep.subr.bf16.mxu0 %v1037_v62 }
 0x3f2   :  { %v1043_v1 = vpop.permute.xlu0 %1042 }
 0x3f4   :  { %2580 = vmatpush3.bf16.msra.mxu1 %v3327_v8  ;;  %2604 = vmatpush3.bf16.msra.mxu0 %v3327_v8 }
 0x3f5   :  { %2581 = vmatprep.subr.bf16.mxu1 %v1043_v1  ;;  %v1021_v33 = vpop.permute.xlu1 %1020 }
 0x3f6   :  { %v1045_v2 = vpop.permute.xlu0 %1044 }
 0x3f8   :  { %2582 = vmatpush3.bf16.msra.mxu1 %v1019_v0 }
 0x3f9   :  { %2583 = vmatprep.subr.bf16.mxu1 %v1045_v2  ;;  %v1023_v60 = vpop.permute.xlu1 %1022 }
 0x3fa   :  { %v1047_v55 = vpop.permute.xlu0 %1046 }
 0x3fc   :  { %2584 = vmatpush3.bf16.msra.mxu1 %v1021_v33 }
 0x3fd   :  { %2585 = vmatprep.subr.bf16.mxu1 %v1047_v55  ;;  %v1025_v5 = vpop.permute.xlu1 %1024 }
 0x3fe   :  { %v1049_v3 = vpop.permute.xlu0 %1048 }
 0x400   :  { %2586 = vmatpush3.bf16.msra.mxu1 %v1023_v60 }
 0x401   :  { %2587 = vmatprep.subr.bf16.mxu1 %v1049_v3 }
 0x404   :  { %2588 = vmatpush3.bf16.msra.mxu1 %v1025_v5 }
 0x407   :  { %1127 = vmatmul.mubr.bf16.vlgmr.msra.gmra.mrb[20].mxu1 %v2895_v6 }
 0x408   :  { %1134 = vmatprep.mubr.bf16.mxu1 %v2898_v7 }
 0x40d   :  { %v1160_v11 = vpop.permute.xlu1 %1159 }
 0x40e   :  { %v1158_v10 = vpop.permute.xlu0 %1157 }
 0x40f   :  { %1135 = vmatmul.mubr.bf16.gmra.mrb[24].mxu1 %v2900_v9  ;;  %2605 = vmatprep.subr.bf16.mxu0 %v1158_v10 }
 0x410   :  { %2629 = vmatprep.subr.bf16.mxu1 %v1158_v10  ;;  %2606 = vmatpush3.bf16.msra.mxu0 %v3351_v48 }
 0x411   :  { %2630 = vmatpush3.bf16.msra.mxu1 %v3351_v48  ;;  %2607 = vmatprep.subr.bf16.mxu0 %v1160_v11 }
 0x412   :  { %2631 = vmatprep.subr.bf16.mxu1 %v1160_v11  ;;  %1276 = vmatprep.mubr.bf16.mxu1 %v3339_v43 }
 0x414   :  { %2608 = vmatpush3.bf16.msra.mxu0 %v3349_v47 }
 0x415   :  { %2632 = vmatpush3.bf16.msra.mxu1 %v3349_v47  ;;  %2609 = vmatprep.subr.bf16.mxu0 %v1047_v55 }
 0x418   :  { %2610 = vmatpush3.bf16.msra.mxu0 %v1023_v60 }
 0x419   :  { %2611 = vmatprep.subr.bf16.mxu0 %v1049_v3 }
 0x41c   :  { %2612 = vmatpush3.bf16.msra.mxu0 %v1025_v5 }
 0x42d   :  { %v1235_v12 = vpop.permute.xlu1 %1234 }
 0x42e   :  { %v1233_v13 = vpop.permute.xlu0 %1232 }
 0x42f   :  { %2633 = vmatprep.subr.bf16.mxu1 %v1233_v13 }
 0x430   :  { %2634 = vmatpush3.bf16.msra.mxu1 %v3359_v56 }
 0x431   :  { %v1152_v14 = vpop.permute.xlu1 %1151  ;;  %2635 = vmatprep.subr.bf16.mxu1 %v1235_v12 }
 0x432   :  { %v1164_v15 = vpop.permute.xlu0 %1163 }
 0x433   :  { %2613 = vmatprep.subr.bf16.mxu0 %v1164_v15 }
 0x434   :  { %2614 = vmatpush3.bf16.msra.mxu0 %v1152_v14  ;;  %2636 = vmatpush3.bf16.msra.mxu1 %v3357_v53 }
 0x435   :  { %2637 = vmatprep.subr.bf16.mxu1 %v1164_v15  ;;  %v1154_v17 = vpop.permute.xlu1 %1153 }
 0x436   :  { %v1166_v16 = vpop.permute.xlu0 %1165 }
 0x437   :  { %2615 = vmatprep.subr.bf16.mxu0 %v1166_v16 }
 0x438   :  { %2616 = vmatpush3.bf16.msra.mxu0 %v1154_v17  ;;  %2638 = vmatpush3.bf16.msra.mxu1 %v1152_v14 }
 0x439   :  { %2639 = vmatprep.subr.bf16.mxu1 %v1166_v16  ;;  %v1227_v19 = vpop.permute.xlu1 %1226  ;;  %2858 = vmatprep.subr.msk.bf16.mxu0 %vm1331_vm4, %v1299_v22 }
 0x43a   :  { %v1239_v18 = vpop.permute.xlu0 %1238 }
 0x43b   :  { %1202 = vmatmul.mubr.bf16.vlgmr.msra.gmra.mrb[64].mxu0 %v2895_v6 }
 0x43c   :  { %2640 = vmatpush3.bf16.msra.mxu1 %v1154_v17  ;;  %1209 = vmatprep.mubr.bf16.mxu0 %v2898_v7 }
 0x43d   :  { %2641 = vmatprep.subr.bf16.mxu1 %v1239_v18  ;;  %v1229_v21 = vpop.permute.xlu1 %1228  ;;  %2801 = vmatpush3.bf16.msra.mxu0 %v1333_v23 }
 0x43e   :  { %v1241_v20 = vpop.permute.xlu0 %1240 }
 0x440   :  { %2642 = vmatpush3.bf16.msra.mxu1 %v1227_v19 }
 0x441   :  { %2643 = vmatprep.subr.bf16.mxu1 %v1241_v20 }
 0x443   :  { %1210 = vmatmul.mubr.bf16.gmra.mrb[68].mxu0 %v2900_v9 }
 0x444   :  { %2644 = vmatpush3.bf16.msra.mxu1 %v1229_v21 }
 0x447   :  { %1277 = vmatmul.mubr.bf16.vlgmr.msra.gmra.mrb[28].mxu1 %v2895_v6 }
 0x448   :  { %1284 = vmatprep.mubr.bf16.mxu1 %v2898_v7 }
 0x44e   :  { %v1062_v32 = vpop.permute.xlu1 %1061 }
 0x44f   :  { %1285 = vmatmul.mubr.bf16.gmra.mrb[32].mxu1 %v2900_v9  ;;  %v1057_v28 = vpop.permute.xlu0 %1056 }
 0x452   :  { %v1072_v46 = vpop.permute.xlu1 %1071 }
 0x453   :  { %v1067_v42 = vpop.permute.xlu0 %1066 }
 0x4da   :  { %v2589_v25 = vpop.f32.mrb[20].mxu1 }
 0x4db   :  { %v2590_v26 = vpop.f32.mrb[21].mxu1 }
 0x4dc   :  { %v2591_v24 = vadd.f32 %v2590_v26, %v2589_v25  ;;  %v2592_v27 = vpop.f32.mrb[22].mxu1 }
 0x4dd   :  { %v2593_v29 = vpop.f32.mrb[23].mxu1 }
 0x4de   :  { %v1129_v30 = vadd.f32 %v2591_v24, %v1057_v28  ;;  %v2594_v31 = vadd.f32 %v2593_v29, %v2592_v27 }
 0x4e0   :  { %v1132_v34 = vadd.f32 %v2594_v31, %v1062_v32  ;;  %v1143_v36 = vmax.f32 %v1129_v30, 0.0 }
 0x4e2   :  { %v1144_v37 = vmax.f32 %v1132_v34, 0.0  ;;  %v2595_v4 = vpop.f32.mrb[24].mxu1 }
 0x4e3   :  { %v2596_v38 = vpop.f32.mrb[25].mxu1 }
 0x4e4   :  { %v1147_v39 = vpack.c.bf16 %v1144_v37, %v1143_v36  ;;  %v2597_v8 = vadd.f32 %v2596_v38, %v2595_v4  ;;  %v2598_v41 = vpop.f32.mrb[26].mxu1 }
 0x4e5   :  { %v2599_v43 = vpop.f32.mrb[27].mxu1 }
 0x4e6   :  { %v1137_v35 = vadd.f32 %v2597_v8, %v1067_v42  ;;  %v2600_v44 = vadd.f32 %v2599_v43, %v2598_v41  ;;  %2802 = vmatprep.mubr.msk.bf16.mxu0 %vm1312_vm5, %v1147_v39 }
 0x4e8   :  { %v1140_v47 = vadd.f32 %v2600_v44, %v1072_v46  ;;  %v1145_v40 = vmax.f32 %v1137_v35, 0.0 }
 0x4ea   :  { %v1146_v48 = vmax.f32 %v1140_v47, 0.0 }
 0x4ec   :  { %v1148_v49 = vpack.c.bf16 %v1146_v48, %v1145_v40  ;;  %v2903_v48 = vld [vmem:[%s3746_s8 + $0x4] ss:$12 sps:$4 sm:$0xff]  }
 0x4ee   :  { %2803 = vmatmul.mubr.msk.bf16.vlgmr.msra.gmra.mrb[72].mxu0 %vm1312_vm5, %v1148_v49  ;;  %v1309_v49 = vld [vmem:[%s3747_s9 + $0x8] sm:$0xff] }
 0x50e   :  { %v2617_v51 = vpop.f32.mrb[64].mxu0 }
 0x50f   :  { %v2618_v52 = vpop.f32.mrb[65].mxu0 }
 0x510   :  { %v2619_v53 = vadd.f32 %v2618_v52, %v2617_v51  ;;  %v2620_v54 = vpop.f32.mrb[66].mxu0  ;;  %v1308_v51 = vld [vmem:[%s3747_s9] sm:$0xff]  ;;  %v1311_v52 = vld [vmem:[%s3747_s9 + $0x18] sm:$0xff] }
 0x511   :  { %v2621_v56 = vpop.f32.mrb[67].mxu0 }
 0x512   :  { %v1204_v57 = vadd.f32 %v2619_v53, %v1057_v28  ;;  %v2622_v58 = vadd.f32 %v2621_v56, %v2620_v54  ;;  %v1310_v53 = vld [vmem:[%s3747_s9 + $0x10] sm:$0xff]  ;;  %v1674_v54 = vld [vmem:[%s3749_s11 + $0x88] sm:$0xff]  ;;  %v1673_v56 = vld [vmem:[%s3749_s11 + $0x80] sm:$0xff] }
 0x514   :  { %v1207_v45 = vadd.f32 %v2622_v58, %v1062_v32  ;;  %v1218_v59 = vmax.f32 %v1204_v57, 0.0  ;;  %v1658_v57 = vld [vmem:[%s3749_s11 + $0x8] sm:$0xff]  ;;  %v1657_v58 = vld [vmem:[%s3749_s11] sm:$0xff] }
 0x516   :  { %v1219_v61 = vmax.f32 %v1207_v45, 0.0  ;;  %v2623_v50 = vpop.f32.mrb[68].mxu0  ;;  %v1676_v45 = vld [vmem:[%s3749_s11 + $0x98] sm:$0xff] }
 0x517   :  { %v2624_v62 = vpop.f32.mrb[69].mxu0 }
 0x518   :  { %v1222_v63 = vpack.c.bf16 %v1219_v61, %v1218_v59  ;;  %v2625_v0 = vadd.f32 %v2624_v62, %v2623_v50  ;;  %v2626_v1 = vpop.f32.mrb[70].mxu0  ;;  %v1675_v59 = vld [vmem:[%s3749_s11 + $0x90] sm:$0xff]  ;;  %v1660_v61 = vld [vmem:[%s3749_s11 + $0x18] sm:$0xff]  ;;  %v1678_v62 = vld [vmem:[%s3749_s11 + $0xa8] sm:$0xff] }
 0x519   :  { %v2627_v2 = vpop.f32.mrb[71].mxu0  ;;  %v1659_v50 = vld [vmem:[%s3749_s11 + $0x10] sm:$0xff] }
 0x51a   :  { %v1212_v33 = vadd.f32 %v2625_v0, %v1067_v42  ;;  %v2628_v55 = vadd.f32 %v2627_v2, %v2626_v1  ;;  %v2645_v60 = vpop.f32.mrb[28].mxu1  ;;  %2806 = vmatprep.mubr.msk.bf16.mxu0 %vm1312_vm5, %v1222_v63  ;;  %v1677_v63 = vld [vmem:[%s3749_s11 + $0xa0] sm:$0xff]  ;;  %v1662_v0 = vld [vmem:[%s3749_s11 + $0x28] sm:$0xff]  ;;  %v1680_v2 = vld [vmem:[%s3749_s11 + $0xb8] sm:$0xff] }
 0x51b   :  { %v2646_v3 = vpop.f32.mrb[29].mxu1  ;;  %v1661_v1 = vld [vmem:[%s3749_s11 + $0x20] sm:$0xff] }
 0x51c   :  { %v1215_v5 = vadd.f32 %v2628_v55, %v1072_v46  ;;  %v2647_v6 = vadd.f32 %v2646_v3, %v2645_v60  ;;  %v2648_v7 = vpop.f32.mrb[30].mxu1  ;;  %v1220_v10 = vmax.f32 %v1212_v33, 0.0  ;;  %v1679_v33 = vld [vmem:[%s3749_s11 + $0xb0] sm:$0xff]  ;;  %v1664_v55 = vld [vmem:[%s3749_s11 + $0x38] sm:$0xff]  ;;  %v1682_v3 = vld [vmem:[%s3749_s11 + $0xc8] sm:$0xff] }
 0x51d   :  { %v2649_v9 = vpop.f32.mrb[31].mxu1  ;;  %v1663_v60 = vld [vmem:[%s3749_s11 + $0x30] sm:$0xff] }
 0x51e   :  { %v1221_v11 = vmax.f32 %v1215_v5, 0.0  ;;  %v1279_v12 = vadd.f32 %v2647_v6, %v1057_v28  ;;  %v2650_v13 = vadd.f32 %v2649_v9, %v2648_v7  ;;  %v1681_v5 = vld [vmem:[%s3749_s11 + $0xc0] sm:$0xff]  ;;  %v1666_v6 = vld [vmem:[%s3749_s11 + $0x48] sm:$0xff]  ;;  %v1684_v9 = vld [vmem:[%s3749_s11 + $0xd8] sm:$0xff] }
 0x51f   :  { %v1665_v7 = vld [vmem:[%s3749_s11 + $0x40] sm:$0xff] }
 0x520   :  { %v1223_v14 = vpack.c.bf16 %v1221_v11, %v1220_v10  ;;  %v1282_v15 = vadd.f32 %v2650_v13, %v1062_v32  ;;  %v1293_v16 = vmax.f32 %v1279_v12, 0.0  ;;  %v1683_v10 = vld [vmem:[%s3749_s11 + $0xd0] sm:$0xff]  ;;  %v1668_v11 = vld [vmem:[%s3749_s11 + $0x58] sm:$0xff]  ;;  %v1686_v13 = vld [vmem:[%s3749_s11 + $0xe8] sm:$0xff] }
 0x521   :  { %v1667_v12 = vld [vmem:[%s3749_s11 + $0x50] sm:$0xff] }
 0x522   :  { %v1294_v17 = vmax.f32 %v1282_v15, 0.0  ;;  %v2651_v18 = vpop.f32.mrb[32].mxu1  ;;  %2807 = vmatmul.mubr.msk.bf16.gmra.mrb[76].mxu0 %vm1312_vm5, %v1223_v14  ;;  %v1685_v14 = vld [vmem:[%s3749_s11 + $0xe0] sm:$0xff]  ;;  %v1670_v15 = vld [vmem:[%s3749_s11 + $0x68] sm:$0xff] }
 0x523   :  { %v2652_v19 = vpop.f32.mrb[33].mxu1 }
 0x524   :  { %v1297_v20 = vpack.c.bf16 %v1294_v17, %v1293_v16  ;;  %v2653_v21 = vadd.f32 %v2652_v19, %v2651_v18  ;;  %v2654_v22 = vpop.f32.mrb[34].mxu1  ;;  %v1669_v16 = vld [vmem:[%s3749_s11 + $0x60] sm:$0xff]  ;;  %v1688_v17 = vld [vmem:[%s3749_s11 + $0xf8] sm:$0xff]  ;;  %v1687_v18 = vld [vmem:[%s3749_s11 + $0xf0] sm:$0xff] }
 0x525   :  { %v2655_v23 = vpop.f32.mrb[35].mxu1  ;;  %v1672_v19 = vld [vmem:[%s3749_s11 + $0x78] sm:$0xff] }
 0x526   :  { %v1287_v25 = vadd.f32 %v2653_v21, %v1067_v42  ;;  %v2656_v26 = vadd.f32 %v2655_v23, %v2654_v22  ;;  %2810 = vmatprep.mubr.msk.bf16.mxu0 %vm1312_vm5, %v1297_v20  ;;  %v1671_v20 = vld [vmem:[%s3749_s11 + $0x70] sm:$0xff]  ;;  %v2187_v21 = vld [vmem:[%s3751_s13] sm:$0x3f] }
 0x528   :  { %v1290_v24 = vadd.f32 %v2656_v26, %v1072_v46  ;;  %v1295_v27 = vmax.f32 %v1287_v25, 0.0 }
 0x52a   :  { %v1296_v28 = vmax.f32 %v1290_v24, 0.0 }
 0x52c   :  { %v1298_v29 = vpack.c.bf16 %v1296_v28, %v1295_v27 }
 0x52e   :  { %2811 = vmatmul.mubr.msk.bf16.gmra.mrb[80].mxu0 %vm1312_vm5, %v1298_v29 }
 0x52f   :  { %1553 = vmatprep.mubr.bf16.mxu0 %v2903_v48 }
 0x5c1   :  { %v2804_v30 = vpop.f32.mrb[72].mxu0 }
 0x5c2   :  { %v1369_v31 = vpop.f32.mrb[73].mxu0 }
 0x5c3   :  { %v2805_v32 = vpop.f32.mrb[74].mxu0 }
 0x5c4   :  { %v3420_v34 = vpack.c.bf16 %v2805_v32, %v2804_v30  ;;  %v1372_v36 = vpop.f32.mrb[75].mxu0  ;;  %v2901_v32 = vld [vmem:[%s3746_s8] ss:$12 sps:$4 sm:$0xff]  }
 0x5c5   :  { %v3422_v37 = vpack.c.bf16 %v1372_v36, %v1369_v31  ;;  %v2904_v36 = vld [vmem:[%s3746_s8 + $0x1c] ss:$12 sps:$4 sm:$0xff]  }
 0x5f5   :  { %v2808_v4 = vpop.f32.mrb[76].mxu0 }
 0x5f6   :  { %v1385_v38 = vpop.f32.mrb[77].mxu0 }
 0x5f7   :  { %v2809_v39 = vpop.f32.mrb[78].mxu0 }
 0x5f8   :  { %v3424_v8 = vpack.c.bf16 %v2809_v39, %v2808_v4  ;;  %v1388_v41 = vpop.f32.mrb[79].mxu0  ;;  %v2906_v4 = vld [vmem:[%s3746_s8 + $0x18] ss:$12 sps:$4 sm:$0xff]   ;;  %v2908_v39 = vld [vmem:[%s3746_s8 + $0x20] ss:$12 sps:$4 sm:$0xff]  }
 0x5f9   :  { %v3426_v42 = vpack.c.bf16 %v1388_v41, %v1385_v38  ;;  %v2907_v38 = vld [vmem:[%s3746_s8 + $0x8] ss:$12 sps:$4 sm:$0xff]  }
 0x5fa   :  { %1434 = vrot.lane.b32.xlu1 %v3424_v8, %s2964_s7 }
 0x5fb   :  { %1432 = vrot.lane.b32.xlu0 %v3426_v42, %s2964_s7 }
 0x601   :  { %v2812_v43 = vpop.f32.mrb[80].mxu0 }
 0x602   :  { %v1401_v35 = vpop.f32.mrb[81].mxu0 }
 0x603   :  { %v2813_v44 = vpop.f32.mrb[82].mxu0 }
 0x604   :  { %v3430_v46 = vpack.c.bf16 %v2813_v44, %v2812_v43  ;;  %v1404_v47 = vpop.f32.mrb[83].mxu0 }
 0x605   :  { %v3432_v40 = vpack.c.bf16 %v1404_v47, %v1401_v35 }
 0x606   :  { %1438 = vrot.lane.b32.xlu1 %v3430_v46, %s2964_s7 }
 0x607   :  { %1436 = vrot.lane.b32.xlu0 %v3432_v40, %s2964_s7 }
 0x60a   :  { %1448 = vrot.lane.b32.xlu1 %v3420_v34, %s2965_s2 }
 0x60b   :  { %1446 = vrot.lane.b32.xlu0 %v3422_v37, %s2965_s2 }
 0x60e   :  { %1428 = vrot.lane.b32.xlu1 %v3422_v37, %s2964_s7 }
 0x60f   :  { %1450 = vrot.lane.b32.xlu0 %v3426_v42, %s2965_s2 }
 0x612   :  { %1430 = vrot.lane.b32.xlu1 %v3420_v34, %s2964_s7 }
 0x613   :  { %1452 = vrot.lane.b32.xlu0 %v3424_v8, %s2965_s2 }
 0x616   :  { %1456 = vrot.lane.b32.xlu1 %v3430_v46, %s2965_s2 }
 0x617   :  { %1454 = vrot.lane.b32.xlu0 %v3432_v40, %s2965_s2 }
 0x61a   :  { %1471 = vperm.xlu1 %2875, %v1309_v49  }
 0x61b   :  { %1466 = vperm.xlu0 %2876, %v1308_v51  }
 0x61e   :  { %1481 = vperm.xlu1 %2875, %v1311_v52  }
 0x61f   :  { %1476 = vperm.xlu0 %2876, %v1310_v53  }
 0x622   :  { %1776 = vperm.xlu1 %2875, %v1674_v54  }
 0x623   :  { %1771 = vperm.xlu0 %2876, %v1673_v56  }
 0x626   :  { %1696 = vperm.xlu1 %2875, %v1658_v57  }
 0x627   :  { %1691 = vperm.xlu0 %2876, %v1657_v58  }
 0x62a   :  { %1786 = vperm.xlu1 %2875, %v1676_v45  }
 0x62b   :  { %1781 = vperm.xlu0 %2876, %v1675_v59  }
 0x62e   :  { %1706 = vperm.xlu1 %2875, %v1660_v61  }
 0x62f   :  { %1701 = vperm.xlu0 %2876, %v1659_v50  }
 0x632   :  { %1796 = vperm.xlu1 %2875, %v1678_v62  }
 0x633   :  { %1791 = vperm.xlu0 %2876, %v1677_v63  }
 0x636   :  { %1716 = vperm.xlu1 %2875, %v1662_v0  }
 0x637   :  { %1711 = vperm.xlu0 %2876, %v1661_v1  }
 0x63a   :  { %1806 = vperm.xlu1 %2875, %v1680_v2  }
 0x63b   :  { %1801 = vperm.xlu0 %2876, %v1679_v33  }
 0x63e   :  { %1726 = vperm.xlu1 %2875, %v1664_v55  }
 0x63f   :  { %1721 = vperm.xlu0 %2876, %v1663_v60  }
 0x642   :  { %1816 = vperm.xlu1 %2875, %v1682_v3  }
 0x643   :  { %1811 = vperm.xlu0 %2876, %v1681_v5  }
 0x646   :  { %1736 = vperm.xlu1 %2875, %v1666_v6  }
 0x647   :  { %1731 = vperm.xlu0 %2876, %v1665_v7  }
 0x64a   :  { %1826 = vperm.xlu1 %2875, %v1684_v9  }
 0x64b   :  { %1821 = vperm.xlu0 %2876, %v1683_v10   ;;  %v2910_v10 = vld [vmem:[%s3748_s10 + $0x8] sm:$0xff]  }
 0x64e   :  { %1746 = vperm.xlu1 %2875, %v1668_v11   ;;  %v2911_v11 = vld [vmem:[%s3748_s10 + $0x10] sm:$0xff]  }
 0x64f   :  { %1741 = vperm.xlu0 %2876, %v1667_v12   ;;  %v2912_v12 = vld [vmem:[%s3748_s10 + $0x18] sm:$0xff]  }
 0x652   :  { %1836 = vperm.xlu1 %2875, %v1686_v13   ;;  %v2913_v13 = vld [vmem:[%s3748_s10 + $0x20] sm:$0xff]  }
 0x653   :  { %1831 = vperm.xlu0 %2876, %v1685_v14   ;;  %v2914_v14 = vld [vmem:[%s3748_s10 + $0x28] sm:$0xff]  }
 0x656   :  { %1756 = vperm.xlu1 %2875, %v1670_v15   ;;  %v2915_v15 = vld [vmem:[%s3748_s10 + $0x30] sm:$0xff]  }
 0x657   :  { %1751 = vperm.xlu0 %2876, %v1669_v16   ;;  %v2916_v16 = vld [vmem:[%s3748_s10 + $0x38] sm:$0xff]  }
 0x65a   :  { %1846 = vperm.xlu1 %2875, %v1688_v17   ;;  %v2917_v17 = vld [vmem:[%s3748_s10 + $0x40] sm:$0xff]  }
 0x65b   :  { %1841 = vperm.xlu0 %2876, %v1687_v18   ;;  %v2918_v18 = vld [vmem:[%s3748_s10 + $0x48] sm:$0xff]  }
 0x65e   :  { %1766 = vperm.xlu1 %2875, %v1672_v19   ;;  %v2919_v19 = vld [vmem:[%s3748_s10 + $0x50] sm:$0xff]  }
 0x65f   :  { %1761 = vperm.xlu0 %2876, %v1671_v20   ;;  %v2920_v20 = vld [vmem:[%s3748_s10 + $0x58] sm:$0xff]  }
 0x663   :  { %2190 = vperm.xlu0 %2876, %v2187_v21   ;;  %v2921_v21 = vld [vmem:[%s3748_s10 + $0x60] sm:$0xff]  }
 0x66c   :  { %v1435_v23 = vpop.permute.xlu1 %1434 }
 0x66d   :  { %v1433_v22 = vpop.permute.xlu0 %1432 }
 0x66e   :  { %2664 = vmatprep.subr.bf16.mxu0 %v1433_v22  ;;  %v2922_v22 = vld [vmem:[%s3748_s10 + $0x68] sm:$0xff]  }
 0x66f   :  { %2665 = vmatpush3.bf16.msra.mxu0 %v3422_v37 }
 0x670   :  { %2666 = vmatprep.subr.bf16.mxu0 %v1435_v23  ;;  %v2923_v23 = vld [vmem:[%s3748_s10 + $0x70] sm:$0xff]  }
 0x673   :  { %2667 = vmatpush3.bf16.msra.mxu0 %v3420_v34 }
 0x678   :  { %v1439_v26 = vpop.permute.xlu1 %1438 }
 0x679   :  { %v1437_v25 = vpop.permute.xlu0 %1436 }
 0x67a   :  { %2668 = vmatprep.subr.bf16.mxu0 %v1437_v25  ;;  %v2924_v25 = vld [vmem:[%s3748_s10 + $0x78] sm:$0xff]  }
 0x67b   :  { %2669 = vmatpush3.bf16.msra.mxu0 %v3426_v42 }
 0x67c   :  { %2670 = vmatprep.subr.bf16.mxu0 %v1439_v26  ;;  %v1449_v27 = vpop.permute.xlu1 %1448 }
 0x67d   :  { %v1447_v24 = vpop.permute.xlu0 %1446 }
 0x67f   :  { %2671 = vmatpush3.bf16.msra.mxu0 %v3424_v8  ;;  %v2909_v8 = vld [vmem:[%s3748_s10] sm:$0xff]   ;;  %s2966_s10 = smov [#allocation2]  }
 0x680   :  { %2672 = vmatprep.subr.bf16.mxu0 %v1447_v24  ;;  %v1429_v29 = vpop.permute.xlu1 %1428  ;;  %2826 = vmatprep.mubr.msk.bf16.mxu1 %vm1514_vm6, %v2909_v8 }
 0x681   :  { %v1451_v28 = vpop.permute.xlu0 %1450 }
 0x683   :  { %2673 = vmatpush3.bf16.msra.mxu0 %v3432_v40 }
 0x684   :  { %2674 = vmatprep.subr.bf16.mxu0 %v1449_v27  ;;  %v1431_v31 = vpop.permute.xlu1 %1430 }
 0x685   :  { %v1453_v30 = vpop.permute.xlu0 %1452 }
 0x687   :  { %2675 = vmatpush3.bf16.msra.mxu0 %v3430_v46 }
 0x688   :  { %2676 = vmatprep.subr.bf16.mxu0 %v1451_v28  ;;  %v1457_v37 = vpop.permute.xlu1 %1456 }
 0x689   :  { %v1455_v34 = vpop.permute.xlu0 %1454 }
 0x68b   :  { %2677 = vmatpush3.bf16.msra.mxu0 %v1429_v29  ;;  %v3652_v29 = vld [vmem:[%s3750_s12] sm:$0x77]  ;;  %s2280_s12 = sshll.u32 %s2966_s10, 4  ;;  %s2281_s12 = int_to_ptr.vmem [resolvable:$true] %s2280_s12 }
 0x68c   :  { %2678 = vmatprep.subr.bf16.mxu0 %v1453_v30  ;;  %v2373_v30 = vcombine.high %v3652_v29, %v3652_v29  ;;  %s2927_s6 = scalar_lea.vmem %s2281_s12, 32  ;;  %p2932_p1 = scmp.lt.s32.totalorder %s2281_s12, %s2281_s12 }
 0x68d   :  { %p2928_p0 = scmp.ne.s32.totalorder %s2281_s12, %s2927_s6  ;;  %p2933_p2 = scmp.lt.s32.totalorder %s2927_s6, %s2927_s6 }
 0x68f   :  { %2679 = vmatpush3.bf16.msra.mxu0 %v1431_v31  ;;  %p2934_p3 = por %p2933_p2, %p2932_p1 }
 0x690   :  { %2814 = vmatprep.subr.bf16.mxu0 %v1455_v34 }
 0x691   :  { %p2935_p4 = pnand %p2934_p3, %p2928_p0 }
 0x692   :  { %1554 = vmatmul.mubr.bf16.vlgmr.msra.gmra.mrb[84].mxu0 %v2901_v32 }
 0x693   :  { %2815 = vmatpush3.bf16.msra.mxu0 %v1455_v34  ;;  %1561 = vmatprep.mubr.bf16.mxu0 %v2904_v36 }
 0x694   :  { %2816 = vmatprep.subr.bf16.mxu0 %v1457_v37 }
 0x697   :  { %2817 = vmatpush3.bf16.msra.mxu0 %v1457_v37 }
 0x699   :  { %v1472_v49 = vpop.permute.xlu1 %1471 }
 0x69a   :  { %1562 = vmatmul.mubr.bf16.gmra.mrb[88].mxu0 %v2906_v4  ;;  %v1467_v47 = vpop.permute.xlu0 %1466 }
 0x69b   :  { %2818 = vmatprep.mubr.msk.bf16.mxu0 %vm1514_vm6, %v2907_v38 }
 0x69d   :  { %v1482_v58 = vpop.permute.xlu1 %1481 }
 0x69e   :  { %v1477_v56 = vpop.permute.xlu0 %1476 }
 0x6a1   :  { %v3647_v24 = vpop.permute.xlu1 %1776 }
 0x6a2   :  { %2819 = vmatmul.mubr.msk.bf16.vlgmr.msra.gmra.mrb[92].mxu0 %vm1514_vm6, %v2908_v39  ;;  %v3645_v26 = vpop.permute.xlu0 %1771 }
 0x6a3   :  { %2232 = vmatprep.mubr.bf16.mxu0 %v2373_v30 }
 0x6a5   :  { %v1697_v28 = vpop.permute.xlu1 %1696 }
 0x6a6   :  { %v1692_v27 = vpop.permute.xlu0 %1691 }
 0x6a9   :  { %v3658_v32 = vpop.permute.xlu1 %1786 }
 0x6aa   :  { %v3656_v31 = vpop.permute.xlu0 %1781 }
 0x6ad   :  { %v1707_v36 = vpop.permute.xlu1 %1706 }
 0x6ae   :  { %v1702_v34 = vpop.permute.xlu0 %1701 }
 0x6b1   :  { %v3662_v4 = vpop.permute.xlu1 %1796 }
 0x6b2   :  { %v3660_v37 = vpop.permute.xlu0 %1791 }
 0x6b5   :  { %v1717_v39 = vpop.permute.xlu1 %1716 }
 0x6b6   :  { %v1712_v38 = vpop.permute.xlu0 %1711 }
 0x6ba   :  { %v3664_v8 = vpop.permute.xlu0 %1801 }
 0x765   :  { %v2680_v41 = vpop.f32.mrb[84].mxu0 }
 0x766   :  { %v2681_v42 = vpop.f32.mrb[85].mxu0 }
 0x767   :  { %v2682_v43 = vadd.f32 %v2681_v42, %v2680_v41  ;;  %v2683_v35 = vpop.f32.mrb[86].mxu0  ;;  %v3666_v41 = vpop.permute.xlu1 %1806 }
 0x768   :  { %v2684_v44 = vpop.f32.mrb[87].mxu0  ;;  %v1722_v42 = vpop.permute.xlu0 %1721 }
 0x769   :  { %v2685_v46 = vadd.f32 %v2684_v44, %v2683_v35  ;;  %v1556_v59 = vadd.f32 %v2682_v43, %v1467_v47 }
 0x76b   :  { %v1559_v1 = vadd.f32 %v2685_v46, %v1472_v49  ;;  %v1727_v43 = vpop.permute.xlu1 %1726 }
 0x76c   :  { %v3668_v35 = vpop.permute.xlu0 %1811 }
 0x76d   :  { %v2686_v40 = vpop.f32.mrb[88].mxu0 }
 0x76e   :  { %v2687_v48 = vpop.f32.mrb[89].mxu0 }
 0x76f   :  { %v2688_v51 = vadd.f32 %v2687_v48, %v2686_v40  ;;  %v2689_v52 = vpop.f32.mrb[90].mxu0  ;;  %v3670_v44 = vpop.permute.xlu1 %1816 }
 0x770   :  { %v2690_v53 = vpop.f32.mrb[91].mxu0  ;;  %v1732_v46 = vpop.permute.xlu0 %1731 }
 0x771   :  { %v2691_v54 = vadd.f32 %v2690_v53, %v2689_v52  ;;  %v1564_v57 = vadd.f32 %v2688_v51, %v1477_v56 }
 0x773   :  { %v1567_v62 = vadd.f32 %v2691_v54, %v1482_v58  ;;  %v1737_v47 = vpop.permute.xlu1 %1736 }
 0x774   :  { %v3672_v40 = vpop.permute.xlu0 %1821 }
 0x775   :  { %v2820_v45 = vpop.f32.mrb[92].mxu0 }
 0x776   :  { %v1613_v61 = vadd.f32 %v2820_v45, %v1564_v57  ;;  %v1604_v50 = vpop.f32.mrb[93].mxu0 }
 0x777   :  { %v1605_v63 = vadd.f32 %v1604_v50, %v1556_v59  ;;  %v2821_v0 = vpop.f32.mrb[94].mxu0  ;;  %v3674_v48 = vpop.permute.xlu1 %1826 }
 0x778   :  { %v1616_v2 = vadd.f32 %v2821_v0, %v1567_v62  ;;  %v1607_v33 = vpop.f32.mrb[95].mxu0  ;;  %v1621_v60 = vmax.f32 %v1613_v61, 0.0  ;;  %v1742_v49 = vpop.permute.xlu0 %1741 }
 0x779   :  { %v1608_v55 = vadd.f32 %v1607_v33, %v1559_v1  ;;  %v1619_v5 = vmax.f32 %v1605_v63, 0.0 }
 0x77a   :  { %v1622_v3 = vmax.f32 %v1616_v2, 0.0 }
 0x77b   :  { %v1620_v6 = vmax.f32 %v1608_v55, 0.0  ;;  %v1747_v54 = vpop.permute.xlu1 %1746 }
 0x77c   :  { %v1624_v7 = vpack.c.bf16 %v1622_v3, %v1621_v60  ;;  %v3676_v62 = vpop.permute.xlu0 %1831 }
 0x77d   :  { %v1623_v9 = vpack.c.bf16 %v1620_v6, %v1619_v5 }
 0x77f   :  { %2822 = vmatprep.subr.bf16.mxu1 %v1623_v9  ;;  %v3680_v2 = vpop.permute.xlu1 %1836 }
 0x780   :  { %2823 = vmatpush3.bf16.msra.mxu1 %v1623_v9 }
 0x781   :  { %2824 = vmatprep.subr.bf16.mxu1 %v1624_v7 }
 0x784   :  { %2825 = vmatpush3.bf16.msra.mxu1 %v1624_v7 }
 0x787   :  { %2827 = vmatmul.mubr.msk.bf16.vlgmr.msra.gmra.mrb[36].mxu1 %vm1514_vm6, %v2910_v10  ;;  %v1752_v10 = vpop.permute.xlu0 %1751 }
 0x788   :  { %2830 = vmatprep.mubr.msk.bf16.mxu1 %vm1514_vm6, %v2911_v11 }
 0x78f   :  { %2831 = vmatmul.mubr.msk.bf16.gmra.mrb[40].mxu1 %vm1514_vm6, %v2912_v12 }
 0x790   :  { %2834 = vmatprep.mubr.msk.bf16.mxu1 %vm1514_vm6, %v2913_v13 }
 0x797   :  { %2835 = vmatmul.mubr.msk.bf16.gmra.mrb[44].mxu1 %vm1514_vm6, %v2914_v14  ;;  %v1757_v14 = vpop.permute.xlu1 %1756 }
 0x798   :  { %2838 = vmatprep.mubr.msk.bf16.mxu1 %vm1514_vm6, %v2915_v15 }
 0x79b   :  { %v3690_v30 = vpop.permute.xlu1 %1846 }
 0x79f   :  { %2839 = vmatmul.mubr.msk.bf16.gmra.mrb[48].mxu1 %vm1514_vm6, %v2916_v16 }
 0x7a0   :  { %2842 = vmatprep.mubr.msk.bf16.mxu1 %vm1514_vm6, %v2917_v17 }
 0x7a7   :  { %2843 = vmatmul.mubr.msk.bf16.gmra.mrb[52].mxu1 %vm1514_vm6, %v2918_v18 }
 0x7a8   :  { %2846 = vmatprep.mubr.msk.bf16.mxu1 %vm1514_vm6, %v2919_v19 }
 0x7af   :  { %2847 = vmatmul.mubr.msk.bf16.gmra.mrb[56].mxu1 %vm1514_vm6, %v2920_v20 }
 0x7b0   :  { %2850 = vmatprep.mubr.msk.bf16.mxu1 %vm1514_vm6, %v2921_v21 }
 0x7b7   :  { %2851 = vmatmul.mubr.msk.bf16.gmra.mrb[60].mxu1 %vm1514_vm6, %v2922_v22  ;;  %v3688_v22 = vpop.permute.xlu0 %1841 }
 0x7b8   :  { %2854 = vmatprep.mubr.msk.bf16.mxu1 %vm1514_vm6, %v2923_v23 }
 0x7bf   :  { %2855 = vmatmul.mubr.msk.bf16.gmra.mrb[64].mxu1 %vm1514_vm6, %v2924_v25 }
 0x85a   :  { %v2828_v51 = vpop.f32.mrb[36].mxu1 }
 0x85b   :  { %v2020_v52 = vadd.f32 %v2828_v51, %v1702_v34  ;;  %v2011_v53 = vpop.f32.mrb[37].mxu1  ;;  %v1762_v51 = vpop.permute.xlu0 %1761 }
 0x85c   :  { %v2012_v56 = vadd.f32 %v2011_v53, %v1692_v27  ;;  %v2829_v57 = vpop.f32.mrb[38].mxu1 }
 0x85d   :  { %v2023_v58 = vadd.f32 %v2829_v57, %v1707_v36  ;;  %v2014_v45 = vpop.f32.mrb[39].mxu1  ;;  %v2140_v61 = vmax.f32 %v2020_v52, 0.0  ;;  %v1767_v57 = vpop.permute.xlu1 %1766 }
 0x85e   :  { %v2015_v59 = vadd.f32 %v2014_v45, %v1697_v28  ;;  %v2138_v63 = vmax.f32 %v2012_v56, 0.0 }
 0x85f   :  { %v2141_v50 = vmax.f32 %v2023_v58, 0.0 }
 0x860   :  { %v2139_v0 = vmax.f32 %v2015_v59, 0.0 }
 0x861   :  { %v3678_v1 = vpack.c.bf16 %v2141_v50, %v2140_v61 }
 0x862   :  { %v3682_v33 = vpack.c.bf16 %v2139_v0, %v2138_v63  ;;  %v2832_v55 = vpop.f32.mrb[40].mxu1 }
 0x863   :  { %v2036_v60 = vadd.f32 %v2832_v55, %v1722_v42  ;;  %v2027_v3 = vpop.f32.mrb[41].mxu1 }
 0x864   :  { %v2028_v5 = vadd.f32 %v2027_v3, %v1712_v38  ;;  %v2833_v6 = vpop.f32.mrb[42].mxu1 }
 0x865   :  { %v2039_v7 = vadd.f32 %v2833_v6, %v1727_v43  ;;  %v2030_v9 = vpop.f32.mrb[43].mxu1  ;;  %v2144_v12 = vmax.f32 %v2036_v60, 0.0 }
 0x866   :  { %v2031_v11 = vadd.f32 %v2030_v9, %v1717_v39  ;;  %v2142_v15 = vmax.f32 %v2028_v5, 0.0 }
 0x867   :  { %v2145_v13 = vmax.f32 %v2039_v7, 0.0 }
 0x868   :  { %v2143_v16 = vmax.f32 %v2031_v11, 0.0 }
 0x869   :  { %v3684_v17 = vpack.c.bf16 %v2145_v13, %v2144_v12 }
 0x86a   :  { %v3686_v18 = vpack.c.bf16 %v2143_v16, %v2142_v15  ;;  %v2836_v19 = vpop.f32.mrb[44].mxu1 }
 0x86b   :  { %v2052_v20 = vadd.f32 %v2836_v19, %v1742_v49  ;;  %v2043_v21 = vpop.f32.mrb[45].mxu1 }
 0x86c   :  { %v2044_v23 = vadd.f32 %v2043_v21, %v1732_v46  ;;  %v2837_v25 = vpop.f32.mrb[46].mxu1 }
 0x86d   :  { %v2055_v27 = vadd.f32 %v2837_v25, %v1747_v54  ;;  %v2046_v28 = vpop.f32.mrb[47].mxu1  ;;  %v2148_v36 = vmax.f32 %v2052_v20, 0.0 }
 0x86e   :  { %v2047_v34 = vadd.f32 %v2046_v28, %v1737_v47  ;;  %v2146_v39 = vmax.f32 %v2044_v23, 0.0 }
 0x86f   :  { %v2149_v38 = vmax.f32 %v2055_v27, 0.0 }
 0x870   :  { %v2147_v42 = vmax.f32 %v2047_v34, 0.0 }
 0x871   :  { %v3692_v43 = vpack.c.bf16 %v2149_v38, %v2148_v36 }
 0x872   :  { %v3694_v52 = vpack.c.bf16 %v2147_v42, %v2146_v39  ;;  %v2840_v49 = vpop.f32.mrb[48].mxu1 }
 0x873   :  { %v2068_v53 = vadd.f32 %v2840_v49, %v1762_v51  ;;  %v2059_v56 = vpop.f32.mrb[49].mxu1 }
 0x874   :  { %v2060_v46 = vadd.f32 %v2059_v56, %v1752_v10  ;;  %v2841_v58 = vpop.f32.mrb[50].mxu1 }
 0x875   :  { %v2071_v54 = vadd.f32 %v2841_v58, %v1767_v57  ;;  %v2062_v45 = vpop.f32.mrb[51].mxu1  ;;  %v2152_v61 = vmax.f32 %v2068_v53, 0.0 }
 0x876   :  { %v2063_v59 = vadd.f32 %v2062_v45, %v1757_v14  ;;  %v2150_v50 = vmax.f32 %v2060_v46, 0.0 }
 0x877   :  { %v2153_v47 = vmax.f32 %v2071_v54, 0.0 }
 0x878   :  { %v2151_v63 = vmax.f32 %v2063_v59, 0.0 }
 0x879   :  { %v3696_v0 = vpack.c.bf16 %v2153_v47, %v2152_v61 }
 0x87a   :  { %v3698_v55 = vpack.c.bf16 %v2151_v63, %v2150_v50  ;;  %v2844_v60 = vpop.f32.mrb[52].mxu1 }
 0x87b   :  { %v2084_v3 = vadd.f32 %v2844_v60, %v3656_v31  ;;  %v2075_v5 = vpop.f32.mrb[53].mxu1 }
 0x87c   :  { %v2076_v6 = vadd.f32 %v2075_v5, %v3645_v26  ;;  %v2845_v7 = vpop.f32.mrb[54].mxu1 }
 0x87d   :  { %v2087_v9 = vadd.f32 %v2845_v7, %v3658_v32  ;;  %v2078_v10 = vpop.f32.mrb[55].mxu1  ;;  %v2156_v12 = vmax.f32 %v2084_v3, 0.0  ;;  %v2191_v3 = vpop.permute.xlu0 %2190 }
 0x87e   :  { %v2079_v11 = vadd.f32 %v2078_v10, %v3647_v24  ;;  %v2154_v14 = vmax.f32 %v2076_v6, 0.0 }
 0x87f   :  { %v2157_v13 = vmax.f32 %v2087_v9, 0.0 }
 0x880   :  { %v2155_v15 = vmax.f32 %v2079_v11, 0.0 }
 0x881   :  { %v2179_v16 = vpack.c.bf16 %v2157_v13, %v2156_v12 }
 0x882   :  { %v2178_v19 = vpack.c.bf16 %v2155_v15, %v2154_v14  ;;  %v2848_v20 = vpop.f32.mrb[56].mxu1 }
 0x883   :  { %v2100_v21 = vadd.f32 %v2848_v20, %v3664_v8  ;;  %v2091_v23 = vpop.f32.mrb[57].mxu1 }
 0x884   :  { %v2092_v31 = vadd.f32 %v2091_v23, %v3660_v37  ;;  %v2849_v25 = vpop.f32.mrb[58].mxu1  ;;  %2714 = vmatprep.subr.bf16.mxu0 %v2178_v19 }
 0x885   :  { %v2103_v26 = vadd.f32 %v2849_v25, %v3666_v41  ;;  %v2094_v32 = vpop.f32.mrb[59].mxu1  ;;  %2715 = vmatpush3.bf16.msra.mxu0 %v3682_v33  ;;  %v2160_v27 = vmax.f32 %v2100_v21, 0.0 }
 0x886   :  { %v2095_v24 = vadd.f32 %v2094_v32, %v3662_v4  ;;  %2716 = vmatprep.subr.bf16.mxu0 %v2179_v16  ;;  %v2158_v34 = vmax.f32 %v2092_v31, 0.0 }
 0x887   :  { %v2161_v28 = vmax.f32 %v2103_v26, 0.0 }
 0x888   :  { %v2159_v36 = vmax.f32 %v2095_v24, 0.0 }
 0x889   :  { %v2181_v38 = vpack.c.bf16 %v2161_v28, %v2160_v27  ;;  %2717 = vmatpush3.bf16.msra.mxu0 %v3678_v1 }
 0x88a   :  { %v2180_v8 = vpack.c.bf16 %v2159_v36, %v2158_v34  ;;  %v2852_v39 = vpop.f32.mrb[60].mxu1 }
 0x88b   :  { %v2116_v37 = vadd.f32 %v2852_v39, %v3672_v40  ;;  %v2107_v42 = vpop.f32.mrb[61].mxu1 }
 0x88c   :  { %v2108_v41 = vadd.f32 %v2107_v42, %v3668_v35  ;;  %v2853_v51 = vpop.f32.mrb[62].mxu1  ;;  %2718 = vmatprep.subr.bf16.mxu0 %v2180_v8 }
 0x88d   :  { %v2119_v33 = vadd.f32 %v2853_v51, %v3674_v48  ;;  %v2110_v4 = vpop.f32.mrb[63].mxu1  ;;  %2719 = vmatpush3.bf16.msra.mxu0 %v3686_v18  ;;  %v2164_v53 = vmax.f32 %v2116_v37, 0.0 }
 0x88e   :  { %v2111_v49 = vadd.f32 %v2110_v4, %v3670_v44  ;;  %2720 = vmatprep.subr.bf16.mxu0 %v2181_v38  ;;  %v2162_v1 = vmax.f32 %v2108_v41, 0.0 }
 0x88f   :  { %v2165_v56 = vmax.f32 %v2119_v33, 0.0 }
 0x890   :  { %v2163_v57 = vmax.f32 %v2111_v49, 0.0 }
 0x891   :  { %v2183_v46 = vpack.c.bf16 %v2165_v56, %v2164_v53  ;;  %2721 = vmatpush3.bf16.msra.mxu0 %v3684_v17 }
 0x892   :  { %v2182_v40 = vpack.c.bf16 %v2163_v57, %v2162_v1  ;;  %v2856_v58 = vpop.f32.mrb[64].mxu1 }
 0x893   :  { %v2132_v35 = vadd.f32 %v2856_v58, %v3688_v22  ;;  %v2123_v54 = vpop.f32.mrb[65].mxu1 }
 0x894   :  { %v2124_v48 = vadd.f32 %v2123_v54, %v3676_v62  ;;  %v2857_v45 = vpop.f32.mrb[66].mxu1  ;;  %2722 = vmatprep.subr.bf16.mxu0 %v2182_v40  ;;  %v2372_v62 = vcombine.low %v3652_v29, %v3652_v29 }
 0x895   :  { %v2135_v18 = vadd.f32 %v2857_v45, %v3690_v30  ;;  %v2126_v44 = vpop.f32.mrb[67].mxu1  ;;  %2723 = vmatpush3.bf16.msra.mxu0 %v3694_v52  ;;  %v2168_v61 = vmax.f32 %v2132_v35, 0.0 }
 0x896   :  { %v2127_v59 = vadd.f32 %v2126_v44, %v3680_v2  ;;  %2724 = vmatprep.subr.bf16.mxu0 %v2183_v46  ;;  %v2166_v17 = vmax.f32 %v2124_v48, 0.0 }
 0x897   :  { %v2169_v47 = vmax.f32 %v2135_v18, 0.0 }
 0x898   :  { %v2167_v50 = vmax.f32 %v2127_v59, 0.0 }
 0x899   :  { %v2185_v63 = vpack.c.bf16 %v2169_v47, %v2168_v61  ;;  %2725 = vmatpush3.bf16.msra.mxu0 %v3692_v43 }
 0x89a   :  { %v2184_v22 = vpack.c.bf16 %v2167_v50, %v2166_v17 }
 0x89c   :  { %2726 = vmatprep.subr.bf16.mxu0 %v2184_v22 }
 0x89d   :  { %2727 = vmatpush3.bf16.msra.mxu0 %v3698_v55 }
 0x89e   :  { %2728 = vmatprep.subr.bf16.mxu0 %v2185_v63 }
 0x8a1   :  { %2729 = vmatpush3.bf16.msra.mxu0 %v3696_v0 }
 0x8a4   :  { %2233 = vmatmul.mubr.bf16.vlgmr.msra.gmra.mrb[96].mxu0 %v2372_v62 }
 0x977   :  { %v2730_v2 = vpop.f32.mrb[96].mxu0 }
 0x978   :  { %v2731_v30 = vpop.f32.mrb[97].mxu0 }
 0x979   :  { %v2732_v52 = vadd.f32 %v2731_v30, %v2730_v2  ;;  %v2733_v60 = vpop.f32.mrb[98].mxu0 }
 0x97a   :  { %v2734_v5 = vpop.f32.mrb[99].mxu0 }
 0x97b   :  { %v2235_v6 = vadd.f32 %v2732_v52, %v2191_v3 }
 0x97d   :  { %2240 = vxpose.xlu1.b32.start.end [1/1] (short) (narrow) %v2235_v6, 8 }
 0x9fd   :  { %v2256_v43 = vpop.trf.xlu1 }
 0x9fe   :  { %2273 = vst.msk [vmem:[#allocation2] sm:$0x3] %vm2272_vm7, %v2256_v43 }
 0x9ff   :  { %2938 = shalt.err (!%p2935_p4)
}
 0xa00   :  { %s2939_s17 = scalar_lea.hbm %s3752_s14, 32 }
 0xa01   :  { %p2940_p5 = scmp.ne.s32.totalorder %s3752_s14, %s2939_s17  ;;  %p2943_p6 = scmp.lt.u32.totalorder %s2939_s17, %s3752_s14 }
 0xa03   :  { %p2945_p7 = pnand %p2943_p6, %p2940_p5 }
 0xa05   :  { %2948 = shalt.err (!%p2945_p7)
}
 0xa06   :  { %2283 = dma.vmem_to_hbm [thread:$0]  %s2281_s12, 32, %s3752_s14, [#allocation3]  }
 0xa07   :  { %2949 = dma.done.wait [#allocation3], 32  }
 0xa08   :  { %2950 = vsyncadd [#allocation3], 4294967264 }
 0xa09   :  { %2287 = vsyncpa [#allocation3], 1 }

</bundles_post_ra>
